<compile_context>
chip_gen: v7x
topology: tpu7x:2x2x1
jax: 0.10.0
libtpu: 0.0.40
codegen_flags: <defaults>
</compile_context>

<pallas_src>
import functools

import jax
import jax.numpy as jnp
from jax import lax
from jax.experimental import pallas as pl
from jax.experimental.pallas import tpu as pltpu


def _round_up(x, m):
    return ((x + m - 1) // m) * m


# ----------------------------------------------------------------------------
# Kernel
# ----------------------------------------------------------------------------
def _lstm_fc_kernel(num_layers, hidden_pad, seq_len,
                    x_ref, wih0_ref, wih_rest_ref, whh_ref, b_ref,
                    wfc_ref, bfc_ref,
                    y_ref, hn_ref, cn_ref,
                    h_scr, c_scr, buf_scr, gx_scr):
    L = num_layers
    Hp = hidden_pad
    Tc, Bb, Dp = x_ref.shape
    chunk = pl.program_id(1)

    @pl.when(chunk == 0)
    def _():
        h_scr[...] = jnp.zeros_like(h_scr)
        c_scr[...] = jnp.zeros_like(c_scr)

    t0 = chunk * Tc  # first global timestep of this chunk

    def run_layer(l):
        """Recurrence over the chunk for layer l; gx_scr holds x-projection."""
        def step(t, carry):
            h, c = carry
            gates = gx_scr[t] + jnp.dot(h.astype(whh_ref.dtype), whh_ref[l],
                                        preferred_element_type=jnp.float32)
            i_g = jax.nn.sigmoid(gates[:, 0 * Hp:1 * Hp])
            f_g = jax.nn.sigmoid(gates[:, 1 * Hp:2 * Hp])
            g_g = jnp.tanh(gates[:, 2 * Hp:3 * Hp])
            o_g = jax.nn.sigmoid(gates[:, 3 * Hp:4 * Hp])
            c_new = f_g * c + i_g * g_g
            h_new = o_g * jnp.tanh(c_new)
            # mask out padded trailing timesteps so h_n / c_n stay correct
            valid = (t0 + t) < seq_len
            h_new = jnp.where(valid, h_new, h)
            c_new = jnp.where(valid, c_new, c)
            buf_scr[t] = h_new  # hidden sequence for the next layer / FC head
            return h_new, c_new

        h_fin, c_fin = lax.fori_loop(0, Tc, step, (h_scr[l], c_scr[l]))
        h_scr[l] = h_fin
        c_scr[l] = c_fin

    # ---- layer 0: input projection batched over the whole chunk -------------
    x2 = x_ref[...].reshape(Tc * Bb, Dp).astype(wih0_ref.dtype)
    gx = jnp.dot(x2, wih0_ref[...], preferred_element_type=jnp.float32) \
        + b_ref[0:1, :]
    gx_scr[...] = gx.reshape(Tc, Bb, 4 * Hp)
    run_layer(0)

    # ---- layers 1..L-1 -------------------------------------------------------
    for l in range(1, L):
        inp = buf_scr[...].reshape(Tc * Bb, Hp).astype(wih_rest_ref.dtype)
        gx = jnp.dot(inp, wih_rest_ref[l - 1],
                     preferred_element_type=jnp.float32) + b_ref[l:l + 1, :]
        gx_scr[...] = gx.reshape(Tc, Bb, 4 * Hp)
        run_layer(l)

    # ---- fused FC head, batched over the whole chunk -------------------------
    top = buf_scr[...].reshape(Tc * Bb, Hp).astype(wfc_ref.dtype)
    y = jnp.dot(top, wfc_ref[...], preferred_element_type=jnp.float32) \
        + bfc_ref[...]
    y_ref[...] = y.reshape(Tc, Bb, y_ref.shape[2]).astype(y_ref.dtype)

    # ---- final state writeback only on the last chunk ------------------------
    @pl.when(chunk == pl.num_programs(1) - 1)
    def _():
        hn_ref[...] = h_scr[...].astype(hn_ref.dtype)
        cn_ref[...] = c_scr[...].astype(cn_ref.dtype)


# ----------------------------------------------------------------------------
# Wrapper
# ----------------------------------------------------------------------------
def handwriting_generator_forward(x, params, *, num_layers, hidden_size,
                                  time_chunk=64, batch_block=8):
    """x: (B, T, input_size). Returns (out (B,T,output_size), (h_n, c_n))."""
    B, T, input_size = x.shape
    L = num_layers
    H = hidden_size
    Hp = params["hidden_pad"]
    Dp = params["input_pad"]
    Op = params["output_pad"]
    output_size = params["output_size"]

    Bb = batch_block
    B_pad = _round_up(B, Bb)
    Tc = min(time_chunk, _round_up(T, 8))
    n_chunks = -(-T // Tc)
    T_pad = n_chunks * Tc
    n_bblk = B_pad // Bb

    # One fused relayout pass: batch-first -> time-major, padded to vreg tiles.
    x_tbd = jnp.transpose(x, (1, 0, 2)).astype(jnp.float32)
    x_tbd = jnp.pad(x_tbd, ((0, T_pad - T), (0, B_pad - B),
                            (0, Dp - input_size)))

    kernel = functools.partial(_lstm_fc_kernel, L, Hp, T)

    grid_spec = pltpu.PrefetchScalarGridSpec(
        num_scalar_prefetch=0,
        grid=(n_bblk, n_chunks),          # (parallel batch blocks, time chunks)
        in_specs=[
            pl.BlockSpec((Tc, Bb, Dp), lambda b, c: (c, b, 0)),       # x chunk
            pl.BlockSpec((Dp, 4 * Hp), lambda b, c: (0, 0)),          # W_ih0^T
            pl.BlockSpec((max(L - 1, 1), Hp, 4 * Hp),
                         lambda b, c: (0, 0, 0)),                     # W_ih l>=1
            pl.BlockSpec((L, Hp, 4 * Hp), lambda b, c: (0, 0, 0)),    # W_hh^T
            pl.BlockSpec((L, 4 * Hp), lambda b, c: (0, 0)),           # b_ih+b_hh
            pl.BlockSpec((Hp, Op), lambda b, c: (0, 0)),              # W_fc^T
            pl.BlockSpec((1, Op), lambda b, c: (0, 0)),               # b_fc
        ],
        out_specs=[
            pl.BlockSpec((Tc, Bb, Op), lambda b, c: (c, b, 0)),       # y chunk
            pl.BlockSpec((L, Bb, Hp), lambda b, c: (0, b, 0)),        # h_n
            pl.BlockSpec((L, Bb, Hp), lambda b, c: (0, b, 0)),        # c_n
        ],
        scratch_shapes=[
            pltpu.VMEM((L, Bb, Hp), jnp.float32),        # h state (all layers)
            pltpu.VMEM((L, Bb, Hp), jnp.float32),        # c state (all layers)
            pltpu.VMEM((Tc, Bb, Hp), jnp.float32),       # hidden seq of a layer
            pltpu.VMEM((Tc, Bb, 4 * Hp), jnp.float32),   # chunk gate projection
        ],
    )

    y_pad, h_pad, c_pad = pl.pallas_call(
        kernel,
        grid_spec=grid_spec,
        out_shape=(
            jax.ShapeDtypeStruct((T_pad, B_pad, Op), jnp.float32),
            jax.ShapeDtypeStruct((L, B_pad, Hp), jnp.float32),
            jax.ShapeDtypeStruct((L, B_pad, Hp), jnp.float32),
        ),
        compiler_params=pltpu.CompilerParams(
            dimension_semantics=("parallel", "arbitrary")),
    )(x_tbd, params["w_ih0_t"], params["w_ih_rest_t"], params["w_hh_t"],
      params["b"], params["w_fc_t"], params["b_fc"])

    out = jnp.transpose(y_pad[:T, :B, :output_size], (1, 0, 2))
    h_n = h_pad[:, :B, :H]
    c_n = c_pad[:, :B, :H]
    return out, (h_n, c_n)


# ----------------------------------------------------------------------------
# Parameter construction (PyTorch-shaped raw params -> padded kernel layout)
# ----------------------------------------------------------------------------
def _pack_gate_matrix(w, H, Hp, Dp):
    """w: (4H, D) in PyTorch i,f,g,o order -> padded transposed (Dp, 4Hp)."""
    D = w.shape[1]
    cols = []
    for g in range(4):
        blk = w[g * H:(g + 1) * H, :]                       # (H, D)
        blk = jnp.pad(blk, ((0, Hp - H), (0, Dp - D)))      # (Hp, Dp)
        cols.append(blk.T)                                  # (Dp, Hp)
    return jnp.concatenate(cols, axis=1)                    # (Dp, 4Hp)


def _pack_gate_bias(b, H, Hp):
    parts = [jnp.pad(b[g * H:(g + 1) * H], (0, Hp - H)) for g in range(4)]
    return jnp.concatenate(parts)                           # (4Hp,)


def pack_params(raw, *, input_size, hidden_size, num_layers, output_size,
                dtype=jnp.float32):
    H, L = hidden_size, num_layers
    Hp = _round_up(H, 128)
    Dp = _round_up(input_size, 128)
    Op = _round_up(output_size, 128)

    w_ih0_t = _pack_gate_matrix(raw["w_ih0"], H, Hp, Dp)
    if L > 1:
        w_ih_rest_t = jnp.stack(
            [_pack_gate_matrix(w, H, Hp, Hp) for w in raw["w_ih_rest"]])
    else:
        w_ih_rest_t = jnp.zeros((1, Hp, 4 * Hp), jnp.float32)   # dummy, unread
    w_hh_t = jnp.stack([_pack_gate_matrix(w, H, Hp, Hp) for w in raw["w_hh"]])
    b = jnp.stack([_pack_gate_bias(bi + bh, H, Hp)
                   for bi, bh in zip(raw["b_ih"], raw["b_hh"])])
    w_fc_t = jnp.pad(raw["w_fc"],
                     ((0, Op - output_size), (0, Hp - H))).T     # (Hp, Op)
    b_fc = jnp.pad(raw["b_fc"], (0, Op - output_size))[None, :]  # (1, Op)

    return {
        "w_ih0_t": w_ih0_t.astype(dtype),
        "w_ih_rest_t": w_ih_rest_t.astype(dtype),
        "w_hh_t": w_hh_t.astype(dtype),
        "b": b.astype(jnp.float32),
        "w_fc_t": w_fc_t.astype(dtype),
        "b_fc": b_fc.astype(jnp.float32),
        "hidden_pad": Hp, "input_pad": Dp, "output_pad": Op,
        "hidden_size": H, "output_size": output_size,
    }


def init_params(key, input_size, hidden_size, num_layers, output_size):
    """Deterministic init matching nn.LSTM / nn.Linear parameter shapes."""
    H, L = hidden_size, num_layers
    k = 1.0 / jnp.sqrt(jnp.float32(H))
    keys = jax.random.split(key, 4 * L + 2)

    def u(kk, shape):
        return jax.random.uniform(kk, shape, jnp.float32, -k, k)

    w_ih0 = u(keys[0], (4 * H, input_size))
    w_hh = [u(keys[1], (4 * H, H))]
    b_ih = [u(keys[2], (4 * H,))]
    b_hh = [u(keys[3], (4 * H,))]
    w_ih_rest = []
    for l in range(1, L):
        w_ih_rest.append(u(keys[4 * l + 0], (4 * H, H)))
        w_hh.append(u(keys[4 * l + 1], (4 * H, H)))
        b_ih.append(u(keys[4 * l + 2], (4 * H,)))
        b_hh.append(u(keys[4 * l + 3], (4 * H,)))
    w_fc = u(keys[4 * L], (output_size, H))
    b_fc = u(keys[4 * L + 1], (output_size,))

    raw = {"w_ih0": w_ih0, "w_ih_rest": w_ih_rest, "w_hh": w_hh,
           "b_ih": b_ih, "b_hh": b_hh, "w_fc": w_fc, "b_fc": b_fc}
    return raw


# ----------------------------------------------------------------------------
# Pure-JAX reference mirroring torch.nn.LSTM (eval) + Linear
# ----------------------------------------------------------------------------
def reference_forward(x, raw, *, num_layers, hidden_size):
    B, T, _ = x.shape
    H, L = hidden_size, num_layers
    h = jnp.zeros((L, B, H), jnp.float32)
    c = jnp.zeros((L, B, H), jnp.float32)
    ys = []
    for t in range(T):
        inp = x[:, t, :]
        for l in range(L):
            w_ih = raw["w_ih0"] if l == 0 else raw["w_ih_rest"][l - 1]
            gates = (inp @ w_ih.T + h[l] @ raw["w_hh"][l].T
                     + raw["b_ih"][l] + raw["b_hh"][l])
            i_g = jax.nn.sigmoid(gates[:, 0 * H:1 * H])
            f_g = jax.nn.sigmoid(gates[:, 1 * H:2 * H])
            g_g = jnp.tanh(gates[:, 2 * H:3 * H])
            o_g = jax.nn.sigmoid(gates[:, 3 * H:4 * H])
            c_new = f_g * c[l] + i_g * g_g
            h_new = o_g * jnp.tanh(c_new)
            h = h.at[l].set(h_new)
            c = c.at[l].set(c_new)
            inp = h_new
        ys.append(inp @ raw["w_fc"].T + raw["b_fc"])
    out = jnp.stack(ys, axis=1)
    return out, (h, c)


if __name__ == "__main__":
    B, T = 2, 8
    input_size, hidden_size, num_layers, output_size = 8, 32, 2, 8

    key = jax.random.PRNGKey(0)
    k_x, k_p = jax.random.split(key)
    x = jax.random.normal(k_x, (B, T, input_size), jnp.float32)
    raw = init_params(k_p, input_size, hidden_size, num_layers, output_size)
    params = pack_params(raw, input_size=input_size, hidden_size=hidden_size,
                         num_layers=num_layers, output_size=output_size)

    out, (h_n, c_n) = handwriting_generator_forward(
        x, params, num_layers=num_layers, hidden_size=hidden_size)
    out = jax.block_until_ready(out)
    h_n = jax.block_until_ready(h_n)
    c_n = jax.block_until_ready(c_n)

    out_ref, (h_ref, c_ref) = reference_forward(
        x, raw, num_layers=num_layers, hidden_size=hidden_size)

    assert out.shape == (B, T, output_size)
    assert h_n.shape == (num_layers, B, hidden_size)
    assert c_n.shape == (num_layers, B, hidden_size)
    assert jnp.allclose(out, out_ref, atol=1e-3, rtol=1e-3)
    assert jnp.allclose(h_n, h_ref, atol=1e-3, rtol=1e-3)
    assert jnp.allclose(c_n, c_ref, atol=1e-3, rtol=1e-3)

    print("KERNEL_OK")
</pallas_src>

<mosaic_0001>
module attributes {stable_mosaic.version = 11 : i64} {
  func.func @_lstm_fc_kernel(%arg0: i32, %arg1: i32, %arg2: memref<8x8x128xf32, #tpu.memory_space<vmem>>, %arg3: memref<128x512xf32, #tpu.memory_space<vmem>>, %arg4: memref<1x128x512xf32, #tpu.memory_space<vmem>>, %arg5: memref<2x128x512xf32, #tpu.memory_space<vmem>>, %arg6: memref<2x512xf32, #tpu.memory_space<vmem>>, %arg7: memref<128x128xf32, #tpu.memory_space<vmem>>, %arg8: memref<1x128xf32, #tpu.memory_space<vmem>>, %arg9: memref<8x8x128xf32, #tpu.memory_space<vmem>>, %arg10: memref<2x8x128xf32, #tpu.memory_space<vmem>>, %arg11: memref<2x8x128xf32, #tpu.memory_space<vmem>>, %arg12: memref<2x8x128xf32, #tpu.memory_space<vmem>>, %arg13: memref<2x8x128xf32, #tpu.memory_space<vmem>>, %arg14: memref<8x8x128xf32, #tpu.memory_space<vmem>>, %arg15: memref<8x8x512xf32, #tpu.memory_space<vmem>>) attributes {dimension_semantics = [#tpu.dimension_semantics<parallel>, #tpu.dimension_semantics<arbitrary>], iteration_bounds = array<i64: 1, 1>, scalar_prefetch = 0 : i64, scratch_operands = 4 : i64, tpu.core_type = #tpu.core_type<tc>, window_params = [{transform_indices = @transform_0, window_bounds = array<i64: 8, 8, 128>}, {pipeline_mode = #tpu.pipeline_mode<synchronous>, transform_indices = @transform_1, window_bounds = array<i64: 128, 512>}, {pipeline_mode = #tpu.pipeline_mode<synchronous>, transform_indices = @transform_2, window_bounds = array<i64: 1, 128, 512>}, {pipeline_mode = #tpu.pipeline_mode<synchronous>, transform_indices = @transform_3, window_bounds = array<i64: 2, 128, 512>}, {pipeline_mode = #tpu.pipeline_mode<synchronous>, transform_indices = @transform_4, window_bounds = array<i64: 2, 512>}, {pipeline_mode = #tpu.pipeline_mode<synchronous>, transform_indices = @transform_5, window_bounds = array<i64: 128, 128>}, {pipeline_mode = #tpu.pipeline_mode<synchronous>, transform_indices = @transform_6, window_bounds = array<i64: 1, 128>}, {transform_indices = @transform_7, window_bounds = array<i64: 8, 8, 128>}, {transform_indices = @transform_8, window_bounds = array<i64: 2, 8, 128>}, {transform_indices = @transform_9, window_bounds = array<i64: 2, 8, 128>}]} {
    %c0_i32 = arith.constant 0 : i32
    %0 = arith.cmpi eq, %arg1, %c0_i32 : i32
    %1 = arith.extui %0 : i1 to i32
    %c0_i32_0 = arith.constant 0 : i32
    %2 = arith.cmpi ne, %1, %c0_i32_0 : i32
    scf.if %2 {
      %cst_65 = arith.constant 0.000000e+00 : f32
      %59 = vector.broadcast %cst_65 : f32 to vector<2x8x128xf32>
      %c0_66 = arith.constant 0 : index
      %c0_67 = arith.constant 0 : index
      %c0_68 = arith.constant 0 : index
      %60 = vector.load %arg12[%c0_66, %c0_67, %c0_68] : memref<2x8x128xf32, #tpu.memory_space<vmem>>, vector<2x8x128xf32>
      tpu.vector_store %arg12[%c0_66, %c0_67, %c0_68], %59 {strides = array<i32>} : memref<2x8x128xf32, #tpu.memory_space<vmem>>, vector<2x8x128xf32>,
      %cst_69 = arith.constant 0.000000e+00 : f32
      %61 = vector.broadcast %cst_69 : f32 to vector<2x8x128xf32>
      %c0_70 = arith.constant 0 : index
      %c0_71 = arith.constant 0 : index
      %c0_72 = arith.constant 0 : index
      %62 = vector.load %arg13[%c0_70, %c0_71, %c0_72] : memref<2x8x128xf32, #tpu.memory_space<vmem>>, vector<2x8x128xf32>
      tpu.vector_store %arg13[%c0_70, %c0_71, %c0_72], %61 {strides = array<i32>} : memref<2x8x128xf32, #tpu.memory_space<vmem>>, vector<2x8x128xf32>,
    } else {
    }
    %c8_i32 = arith.constant 8 : i32
    %3 = arith.muli %arg1, %c8_i32 : i32
    %c0 = arith.constant 0 : index
    %c0_1 = arith.constant 0 : index
    %c0_2 = arith.constant 0 : index
    %4 = vector.load %arg2[%c0, %c0_1, %c0_2] : memref<8x8x128xf32, #tpu.memory_space<vmem>>, vector<8x8x128xf32>
    %5 = vector.shape_cast %4 : vector<8x8x128xf32> to vector<64x128xf32>
    %c0_3 = arith.constant 0 : index
    %c0_4 = arith.constant 0 : index
    %6 = vector.load %arg3[%c0_3, %c0_4] : memref<128x512xf32, #tpu.memory_space<vmem>>, vector<128x512xf32>
    %cst = arith.constant dense<0.000000e+00> : vector<64x512xf32>
    %7 = tpu.matmul %5, %6, %cst {dimension_numbers = #tpu.dot_dimension_numbers<[1], [0], [0], [1], [0, 0, 1, 1], [], []>} : vector<64x128xf32>, vector<128x512xf32>, vector<64x512xf32> -> vector<64x512xf32>
    %c0_5 = arith.constant 0 : index
    %c0_6 = arith.constant 0 : index
    %8 = vector.load %arg6[%c0_5, %c0_6] : memref<2x512xf32, #tpu.memory_space<vmem>>, vector<1x512xf32>
    %9 = vector.broadcast %8 : vector<1x512xf32> to vector<64x512xf32>
    %10 = arith.addf %7, %9 : vector<64x512xf32>
    %11 = vector.shape_cast %10 : vector<64x512xf32> to vector<8x8x512xf32>
    %c0_7 = arith.constant 0 : index
    %c0_8 = arith.constant 0 : index
    %c0_9 = arith.constant 0 : index
    %12 = vector.load %arg15[%c0_7, %c0_8, %c0_9] : memref<8x8x512xf32, #tpu.memory_space<vmem>>, vector<8x8x512xf32>
    tpu.vector_store %arg15[%c0_7, %c0_8, %c0_9], %11 {strides = array<i32>} : memref<8x8x512xf32, #tpu.memory_space<vmem>>, vector<8x8x512xf32>,
    %c0_10 = arith.constant 0 : index
    %c0_11 = arith.constant 0 : index
    %c0_12 = arith.constant 0 : index
    %13 = vector.load %arg12[%c0_10, %c0_11, %c0_12] : memref<2x8x128xf32, #tpu.memory_space<vmem>>, vector<1x8x128xf32>
    %14 = vector.shape_cast %13 : vector<1x8x128xf32> to vector<8x128xf32>
    %c0_13 = arith.constant 0 : index
    %c0_14 = arith.constant 0 : index
    %c0_15 = arith.constant 0 : index
    %15 = vector.load %arg13[%c0_13, %c0_14, %c0_15] : memref<2x8x128xf32, #tpu.memory_space<vmem>>, vector<1x8x128xf32>
    %16 = vector.shape_cast %15 : vector<1x8x128xf32> to vector<8x128xf32>
    %c0_i32_16 = arith.constant 0 : i32
    %c8_i32_17 = arith.constant 8 : i32
    %17 = arith.addi %c0_i32_16, %c8_i32_17 : i32
    %c1_i32 = arith.constant 1 : i32
    %18:2 = scf.for %arg16 = %c0_i32_16 to %17 step %c1_i32 iter_args(%arg17 = %14, %arg18 = %16) -> (vector<8x128xf32>, vector<8x128xf32>)  : i32 {
      %59 = arith.index_cast %arg16 : i32 to index
      %c0_65 = arith.constant 0 : index
      %c0_66 = arith.constant 0 : index
      %60 = vector.load %arg15[%59, %c0_65, %c0_66] : memref<8x8x512xf32, #tpu.memory_space<vmem>>, vector<1x8x512xf32>
      %61 = vector.shape_cast %60 : vector<1x8x512xf32> to vector<8x512xf32>
      %c0_67 = arith.constant 0 : index
      %c0_68 = arith.constant 0 : index
      %c0_69 = arith.constant 0 : index
      %62 = vector.load %arg5[%c0_67, %c0_68, %c0_69] : memref<2x128x512xf32, #tpu.memory_space<vmem>>, vector<1x128x512xf32>
      %63 = vector.shape_cast %62 : vector<1x128x512xf32> to vector<128x512xf32>
      %cst_70 = arith.constant dense<0.000000e+00> : vector<8x512xf32>
      %64 = tpu.matmul %arg17, %63, %cst_70 {dimension_numbers = #tpu.dot_dimension_numbers<[1], [0], [0], [1], [0, 0, 1, 1], [], []>} : vector<8x128xf32>, vector<128x512xf32>, vector<8x512xf32> -> vector<8x512xf32>
      %65 = arith.addf %61, %64 : vector<8x512xf32>
      %66 = vector.extract_strided_slice %65 {offsets = [0, 0], sizes = [8, 128], strides = [1, 1]} : vector<8x512xf32> to vector<8x128xf32>
      %67 = arith.negf %66 : vector<8x128xf32>
      %68 = math.exp %67 : vector<8x128xf32>
      %cst_71 = arith.constant 1.000000e+00 : f32
      %69 = vector.broadcast %cst_71 : f32 to vector<8x128xf32>
      %70 = arith.addf %69, %68 : vector<8x128xf32>
      %71 = arith.divf %69, %70 : vector<8x128xf32>
      %72 = vector.extract_strided_slice %65 {offsets = [0, 128], sizes = [8, 128], strides = [1, 1]} : vector<8x512xf32> to vector<8x128xf32>
      %73 = arith.negf %72 : vector<8x128xf32>
      %74 = math.exp %73 : vector<8x128xf32>
      %cst_72 = arith.constant 1.000000e+00 : f32
      %75 = vector.broadcast %cst_72 : f32 to vector<8x128xf32>
      %76 = arith.addf %75, %74 : vector<8x128xf32>
      %77 = arith.divf %75, %76 : vector<8x128xf32>
      %78 = vector.extract_strided_slice %65 {offsets = [0, 256], sizes = [8, 128], strides = [1, 1]} : vector<8x512xf32> to vector<8x128xf32>
      %79 = math.tanh %78 : vector<8x128xf32>
      %80 = vector.extract_strided_slice %65 {offsets = [0, 384], sizes = [8, 128], strides = [1, 1]} : vector<8x512xf32> to vector<8x128xf32>
      %81 = arith.negf %80 : vector<8x128xf32>
      %82 = math.exp %81 : vector<8x128xf32>
      %cst_73 = arith.constant 1.000000e+00 : f32
      %83 = vector.broadcast %cst_73 : f32 to vector<8x128xf32>
      %84 = arith.addf %83, %82 : vector<8x128xf32>
      %85 = arith.divf %83, %84 : vector<8x128xf32>
      %86 = arith.mulf %77, %arg18 : vector<8x128xf32>
      %87 = arith.mulf %71, %79 : vector<8x128xf32>
      %88 = arith.addf %86, %87 : vector<8x128xf32>
      %89 = math.tanh %88 : vector<8x128xf32>
      %90 = arith.mulf %85, %89 : vector<8x128xf32>
      %91 = arith.addi %3, %arg16 : i32
      %c8_i32_74 = arith.constant 8 : i32
      %92 = arith.cmpi slt, %91, %c8_i32_74 : i32
      %93 = arith.select %92, %90, %arg17 : vector<8x128xf32>
      %94 = arith.select %92, %88, %arg18 : vector<8x128xf32>
      %95 = arith.index_cast %arg16 : i32 to index
      %c0_75 = arith.constant 0 : index
      %c0_76 = arith.constant 0 : index
      %96 = vector.load %arg14[%95, %c0_75, %c0_76] : memref<8x8x128xf32, #tpu.memory_space<vmem>>, vector<1x8x128xf32>
      %97 = vector.shape_cast %96 : vector<1x8x128xf32> to vector<8x128xf32>
      %98 = vector.shape_cast %93 : vector<8x128xf32> to vector<1x8x128xf32>
      tpu.vector_store %arg14[%95, %c0_75, %c0_76], %98 {strides = array<i32>} : memref<8x8x128xf32, #tpu.memory_space<vmem>>, vector<1x8x128xf32>,
      scf.yield %93, %94 : vector<8x128xf32>, vector<8x128xf32>
    }
    %c8_i32_18 = arith.constant 8 : i32
    %c0_19 = arith.constant 0 : index
    %c0_20 = arith.constant 0 : index
    %c0_21 = arith.constant 0 : index
    %19 = vector.load %arg12[%c0_19, %c0_20, %c0_21] : memref<2x8x128xf32, #tpu.memory_space<vmem>>, vector<1x8x128xf32>
    %20 = vector.shape_cast %19 : vector<1x8x128xf32> to vector<8x128xf32>
    %21 = vector.shape_cast %18#0 : vector<8x128xf32> to vector<1x8x128xf32>
    tpu.vector_store %arg12[%c0_19, %c0_20, %c0_21], %21 {strides = array<i32>} : memref<2x8x128xf32, #tpu.memory_space<vmem>>, vector<1x8x128xf32>,
    %c0_22 = arith.constant 0 : index
    %c0_23 = arith.constant 0 : index
    %c0_24 = arith.constant 0 : index
    %22 = vector.load %arg13[%c0_22, %c0_23, %c0_24] : memref<2x8x128xf32, #tpu.memory_space<vmem>>, vector<1x8x128xf32>
    %23 = vector.shape_cast %22 : vector<1x8x128xf32> to vector<8x128xf32>
    %24 = vector.shape_cast %18#1 : vector<8x128xf32> to vector<1x8x128xf32>
    tpu.vector_store %arg13[%c0_22, %c0_23, %c0_24], %24 {strides = array<i32>} : memref<2x8x128xf32, #tpu.memory_space<vmem>>, vector<1x8x128xf32>,
    %c0_25 = arith.constant 0 : index
    %c0_26 = arith.constant 0 : index
    %c0_27 = arith.constant 0 : index
    %25 = vector.load %arg14[%c0_25, %c0_26, %c0_27] : memref<8x8x128xf32, #tpu.memory_space<vmem>>, vector<8x8x128xf32>
    %26 = vector.shape_cast %25 : vector<8x8x128xf32> to vector<64x128xf32>
    %c0_28 = arith.constant 0 : index
    %c0_29 = arith.constant 0 : index
    %c0_30 = arith.constant 0 : index
    %27 = vector.load %arg4[%c0_28, %c0_29, %c0_30] : memref<1x128x512xf32, #tpu.memory_space<vmem>>, vector<1x128x512xf32>
    %28 = vector.shape_cast %27 : vector<1x128x512xf32> to vector<128x512xf32>
    %cst_31 = arith.constant dense<0.000000e+00> : vector<64x512xf32>
    %29 = tpu.matmul %26, %28, %cst_31 {dimension_numbers = #tpu.dot_dimension_numbers<[1], [0], [0], [1], [0, 0, 1, 1], [], []>} : vector<64x128xf32>, vector<128x512xf32>, vector<64x512xf32> -> vector<64x512xf32>
    %c1 = arith.constant 1 : index
    %c0_32 = arith.constant 0 : index
    %30 = vector.load %arg6[%c1, %c0_32] : memref<2x512xf32, #tpu.memory_space<vmem>>, vector<1x512xf32>
    %31 = vector.broadcast %30 : vector<1x512xf32> to vector<64x512xf32>
    %32 = arith.addf %29, %31 : vector<64x512xf32>
    %33 = vector.shape_cast %32 : vector<64x512xf32> to vector<8x8x512xf32>
    %c0_33 = arith.constant 0 : index
    %c0_34 = arith.constant 0 : index
    %c0_35 = arith.constant 0 : index
    %34 = vector.load %arg15[%c0_33, %c0_34, %c0_35] : memref<8x8x512xf32, #tpu.memory_space<vmem>>, vector<8x8x512xf32>
    tpu.vector_store %arg15[%c0_33, %c0_34, %c0_35], %33 {strides = array<i32>} : memref<8x8x512xf32, #tpu.memory_space<vmem>>, vector<8x8x512xf32>,
    %c1_36 = arith.constant 1 : index
    %c0_37 = arith.constant 0 : index
    %c0_38 = arith.constant 0 : index
    %35 = vector.load %arg12[%c1_36, %c0_37, %c0_38] : memref<2x8x128xf32, #tpu.memory_space<vmem>>, vector<1x8x128xf32>
    %36 = vector.shape_cast %35 : vector<1x8x128xf32> to vector<8x128xf32>
    %c1_39 = arith.constant 1 : index
    %c0_40 = arith.constant 0 : index
    %c0_41 = arith.constant 0 : index
    %37 = vector.load %arg13[%c1_39, %c0_40, %c0_41] : memref<2x8x128xf32, #tpu.memory_space<vmem>>, vector<1x8x128xf32>
    %38 = vector.shape_cast %37 : vector<1x8x128xf32> to vector<8x128xf32>
    %c0_i32_42 = arith.constant 0 : i32
    %c8_i32_43 = arith.constant 8 : i32
    %39 = arith.addi %c0_i32_42, %c8_i32_43 : i32
    %c1_i32_44 = arith.constant 1 : i32
    %40:2 = scf.for %arg16 = %c0_i32_42 to %39 step %c1_i32_44 iter_args(%arg17 = %36, %arg18 = %38) -> (vector<8x128xf32>, vector<8x128xf32>)  : i32 {
      %59 = arith.index_cast %arg16 : i32 to index
      %c0_65 = arith.constant 0 : index
      %c0_66 = arith.constant 0 : index
      %60 = vector.load %arg15[%59, %c0_65, %c0_66] : memref<8x8x512xf32, #tpu.memory_space<vmem>>, vector<1x8x512xf32>
      %61 = vector.shape_cast %60 : vector<1x8x512xf32> to vector<8x512xf32>
      %c1_67 = arith.constant 1 : index
      %c0_68 = arith.constant 0 : index
      %c0_69 = arith.constant 0 : index
      %62 = vector.load %arg5[%c1_67, %c0_68, %c0_69] : memref<2x128x512xf32, #tpu.memory_space<vmem>>, vector<1x128x512xf32>
      %63 = vector.shape_cast %62 : vector<1x128x512xf32> to vector<128x512xf32>
      %cst_70 = arith.constant dense<0.000000e+00> : vector<8x512xf32>
      %64 = tpu.matmul %arg17, %63, %cst_70 {dimension_numbers = #tpu.dot_dimension_numbers<[1], [0], [0], [1], [0, 0, 1, 1], [], []>} : vector<8x128xf32>, vector<128x512xf32>, vector<8x512xf32> -> vector<8x512xf32>
      %65 = arith.addf %61, %64 : vector<8x512xf32>
      %66 = vector.extract_strided_slice %65 {offsets = [0, 0], sizes = [8, 128], strides = [1, 1]} : vector<8x512xf32> to vector<8x128xf32>
      %67 = arith.negf %66 : vector<8x128xf32>
      %68 = math.exp %67 : vector<8x128xf32>
      %cst_71 = arith.constant 1.000000e+00 : f32
      %69 = vector.broadcast %cst_71 : f32 to vector<8x128xf32>
      %70 = arith.addf %69, %68 : vector<8x128xf32>
      %71 = arith.divf %69, %70 : vector<8x128xf32>
      %72 = vector.extract_strided_slice %65 {offsets = [0, 128], sizes = [8, 128], strides = [1, 1]} : vector<8x512xf32> to vector<8x128xf32>
      %73 = arith.negf %72 : vector<8x128xf32>
      %74 = math.exp %73 : vector<8x128xf32>
      %cst_72 = arith.constant 1.000000e+00 : f32
      %75 = vector.broadcast %cst_72 : f32 to vector<8x128xf32>
      %76 = arith.addf %75, %74 : vector<8x128xf32>
      %77 = arith.divf %75, %76 : vector<8x128xf32>
      %78 = vector.extract_strided_slice %65 {offsets = [0, 256], sizes = [8, 128], strides = [1, 1]} : vector<8x512xf32> to vector<8x128xf32>
      %79 = math.tanh %78 : vector<8x128xf32>
      %80 = vector.extract_strided_slice %65 {offsets = [0, 384], sizes = [8, 128], strides = [1, 1]} : vector<8x512xf32> to vector<8x128xf32>
      %81 = arith.negf %80 : vector<8x128xf32>
      %82 = math.exp %81 : vector<8x128xf32>
      %cst_73 = arith.constant 1.000000e+00 : f32
      %83 = vector.broadcast %cst_73 : f32 to vector<8x128xf32>
      %84 = arith.addf %83, %82 : vector<8x128xf32>
      %85 = arith.divf %83, %84 : vector<8x128xf32>
      %86 = arith.mulf %77, %arg18 : vector<8x128xf32>
      %87 = arith.mulf %71, %79 : vector<8x128xf32>
      %88 = arith.addf %86, %87 : vector<8x128xf32>
      %89 = math.tanh %88 : vector<8x128xf32>
      %90 = arith.mulf %85, %89 : vector<8x128xf32>
      %91 = arith.addi %3, %arg16 : i32
      %c8_i32_74 = arith.constant 8 : i32
      %92 = arith.cmpi slt, %91, %c8_i32_74 : i32
      %93 = arith.select %92, %90, %arg17 : vector<8x128xf32>
      %94 = arith.select %92, %88, %arg18 : vector<8x128xf32>
      %95 = arith.index_cast %arg16 : i32 to index
      %c0_75 = arith.constant 0 : index
      %c0_76 = arith.constant 0 : index
      %96 = vector.load %arg14[%95, %c0_75, %c0_76] : memref<8x8x128xf32, #tpu.memory_space<vmem>>, vector<1x8x128xf32>
      %97 = vector.shape_cast %96 : vector<1x8x128xf32> to vector<8x128xf32>
      %98 = vector.shape_cast %93 : vector<8x128xf32> to vector<1x8x128xf32>
      tpu.vector_store %arg14[%95, %c0_75, %c0_76], %98 {strides = array<i32>} : memref<8x8x128xf32, #tpu.memory_space<vmem>>, vector<1x8x128xf32>,
      scf.yield %93, %94 : vector<8x128xf32>, vector<8x128xf32>
    }
    %c8_i32_45 = arith.constant 8 : i32
    %c1_46 = arith.constant 1 : index
    %c0_47 = arith.constant 0 : index
    %c0_48 = arith.constant 0 : index
    %41 = vector.load %arg12[%c1_46, %c0_47, %c0_48] : memref<2x8x128xf32, #tpu.memory_space<vmem>>, vector<1x8x128xf32>
    %42 = vector.shape_cast %41 : vector<1x8x128xf32> to vector<8x128xf32>
    %43 = vector.shape_cast %40#0 : vector<8x128xf32> to vector<1x8x128xf32>
    tpu.vector_store %arg12[%c1_46, %c0_47, %c0_48], %43 {strides = array<i32>} : memref<2x8x128xf32, #tpu.memory_space<vmem>>, vector<1x8x128xf32>,
    %c1_49 = arith.constant 1 : index
    %c0_50 = arith.constant 0 : index
    %c0_51 = arith.constant 0 : index
    %44 = vector.load %arg13[%c1_49, %c0_50, %c0_51] : memref<2x8x128xf32, #tpu.memory_space<vmem>>, vector<1x8x128xf32>
    %45 = vector.shape_cast %44 : vector<1x8x128xf32> to vector<8x128xf32>
    %46 = vector.shape_cast %40#1 : vector<8x128xf32> to vector<1x8x128xf32>
    tpu.vector_store %arg13[%c1_49, %c0_50, %c0_51], %46 {strides = array<i32>} : memref<2x8x128xf32, #tpu.memory_space<vmem>>, vector<1x8x128xf32>,
    %c0_52 = arith.constant 0 : index
    %c0_53 = arith.constant 0 : index
    %c0_54 = arith.constant 0 : index
    %47 = vector.load %arg14[%c0_52, %c0_53, %c0_54] : memref<8x8x128xf32, #tpu.memory_space<vmem>>, vector<8x8x128xf32>
    %48 = vector.shape_cast %47 : vector<8x8x128xf32> to vector<64x128xf32>
    %c0_55 = arith.constant 0 : index
    %c0_56 = arith.constant 0 : index
    %49 = vector.load %arg7[%c0_55, %c0_56] : memref<128x128xf32, #tpu.memory_space<vmem>>, vector<128x128xf32>
    %cst_57 = arith.constant dense<0.000000e+00> : vector<64x128xf32>
    %50 = tpu.matmul %48, %49, %cst_57 {dimension_numbers = #tpu.dot_dimension_numbers<[1], [0], [0], [1], [0, 0, 1, 1], [], []>} : vector<64x128xf32>, vector<128x128xf32>, vector<64x128xf32> -> vector<64x128xf32>
    %c0_58 = arith.constant 0 : index
    %c0_59 = arith.constant 0 : index
    %51 = vector.load %arg8[%c0_58, %c0_59] : memref<1x128xf32, #tpu.memory_space<vmem>>, vector<1x128xf32>
    %52 = vector.broadcast %51 : vector<1x128xf32> to vector<64x128xf32>
    %53 = arith.addf %50, %52 : vector<64x128xf32>
    %54 = vector.shape_cast %53 : vector<64x128xf32> to vector<8x8x128xf32>
    %c0_60 = arith.constant 0 : index
    %c0_61 = arith.constant 0 : index
    %c0_62 = arith.constant 0 : index
    %55 = vector.load %arg9[%c0_60, %c0_61, %c0_62] : memref<8x8x128xf32, #tpu.memory_space<vmem>>, vector<8x8x128xf32>
    tpu.vector_store %arg9[%c0_60, %c0_61, %c0_62], %54 {strides = array<i32>} : memref<8x8x128xf32, #tpu.memory_space<vmem>>, vector<8x8x128xf32>,
    %c0_i32_63 = arith.constant 0 : i32
    %56 = arith.cmpi eq, %arg1, %c0_i32_63 : i32
    %57 = arith.extui %56 : i1 to i32
    %c0_i32_64 = arith.constant 0 : i32
    %58 = arith.cmpi ne, %57, %c0_i32_64 : i32
    scf.if %58 {
      %c0_65 = arith.constant 0 : index
      %c0_66 = arith.constant 0 : index
      %c0_67 = arith.constant 0 : index
      %59 = vector.load %arg12[%c0_65, %c0_66, %c0_67] : memref<2x8x128xf32, #tpu.memory_space<vmem>>, vector<2x8x128xf32>
      %c0_68 = arith.constant 0 : index
      %c0_69 = arith.constant 0 : index
      %c0_70 = arith.constant 0 : index
      %60 = vector.load %arg10[%c0_68, %c0_69, %c0_70] : memref<2x8x128xf32, #tpu.memory_space<vmem>>, vector<2x8x128xf32>
      tpu.vector_store %arg10[%c0_68, %c0_69, %c0_70], %59 {strides = array<i32>} : memref<2x8x128xf32, #tpu.memory_space<vmem>>, vector<2x8x128xf32>,
      %c0_71 = arith.constant 0 : index
      %c0_72 = arith.constant 0 : index
      %c0_73 = arith.constant 0 : index
      %61 = vector.load %arg13[%c0_71, %c0_72, %c0_73] : memref<2x8x128xf32, #tpu.memory_space<vmem>>, vector<2x8x128xf32>
      %c0_74 = arith.constant 0 : index
      %c0_75 = arith.constant 0 : index
      %c0_76 = arith.constant 0 : index
      %62 = vector.load %arg11[%c0_74, %c0_75, %c0_76] : memref<2x8x128xf32, #tpu.memory_space<vmem>>, vector<2x8x128xf32>
      tpu.vector_store %arg11[%c0_74, %c0_75, %c0_76], %61 {strides = array<i32>} : memref<2x8x128xf32, #tpu.memory_space<vmem>>, vector<2x8x128xf32>,
    } else {
    }
    return
  }
  func.func @transform_0(%arg0: i32, %arg1: i32) -> (i32, i32, i32) {
    %c0_i32 = arith.constant 0 : i32
    %c0_i32_0 = arith.constant 0 : i32
    return %arg1, %arg0, %c0_i32 : i32, i32, i32
  }
  func.func @transform_1(%arg0: i32, %arg1: i32) -> (i32, i32) {
    %c0_i32 = arith.constant 0 : i32
    %c0_i32_0 = arith.constant 0 : i32
    %c0_i32_1 = arith.constant 0 : i32
    return %c0_i32, %c0_i32_0 : i32, i32
  }
  func.func @transform_2(%arg0: i32, %arg1: i32) -> (i32, i32, i32) {
    %c0_i32 = arith.constant 0 : i32
    %c0_i32_0 = arith.constant 0 : i32
    %c0_i32_1 = arith.constant 0 : i32
    %c0_i32_2 = arith.constant 0 : i32
    return %c0_i32, %c0_i32_0, %c0_i32_1 : i32, i32, i32
  }
  func.func @transform_3(%arg0: i32, %arg1: i32) -> (i32, i32, i32) {
    %c0_i32 = arith.constant 0 : i32
    %c0_i32_0 = arith.constant 0 : i32
    %c0_i32_1 = arith.constant 0 : i32
    %c0_i32_2 = arith.constant 0 : i32
    return %c0_i32, %c0_i32_0, %c0_i32_1 : i32, i32, i32
  }
  func.func @transform_4(%arg0: i32, %arg1: i32) -> (i32, i32) {
    %c0_i32 = arith.constant 0 : i32
    %c0_i32_0 = arith.constant 0 : i32
    %c0_i32_1 = arith.constant 0 : i32
    return %c0_i32, %c0_i32_0 : i32, i32
  }
  func.func @transform_5(%arg0: i32, %arg1: i32) -> (i32, i32) {
    %c0_i32 = arith.constant 0 : i32
    %c0_i32_0 = arith.constant 0 : i32
    %c0_i32_1 = arith.constant 0 : i32
    return %c0_i32, %c0_i32_0 : i32, i32
  }
  func.func @transform_6(%arg0: i32, %arg1: i32) -> (i32, i32) {
    %c0_i32 = arith.constant 0 : i32
    %c0_i32_0 = arith.constant 0 : i32
    %c0_i32_1 = arith.constant 0 : i32
    return %c0_i32, %c0_i32_0 : i32, i32
  }
  func.func @transform_7(%arg0: i32, %arg1: i32) -> (i32, i32, i32) {
    %c0_i32 = arith.constant 0 : i32
    %c0_i32_0 = arith.constant 0 : i32
    return %arg1, %arg0, %c0_i32 : i32, i32, i32
  }
  func.func @transform_8(%arg0: i32, %arg1: i32) -> (i32, i32, i32) {
    %c0_i32 = arith.constant 0 : i32
    %c0_i32_0 = arith.constant 0 : i32
    %c0_i32_1 = arith.constant 0 : i32
    return %c0_i32, %arg0, %c0_i32_0 : i32, i32, i32
  }
  func.func @transform_9(%arg0: i32, %arg1: i32) -> (i32, i32, i32) {
    %c0_i32 = arith.constant 0 : i32
    %c0_i32_0 = arith.constant 0 : i32
    %c0_i32_1 = arith.constant 0 : i32
    return %c0_i32, %arg0, %c0_i32_0 : i32, i32, i32
  }
}

</mosaic_0001>

<bundles_post_ra>
// kernel: tpu_custom_call.1
= control target key start
LH: loop header
LB: loop body
LE: loop exit
PB: predicated region body
PF: predicated region fallthrough
CT: control target
= control target key end

     0   :  { %15 = vsyncpa [#allocation7], 0  ;;  %s2692_s0 = inlined_call_operand.hbm [shape: f32[8,8,128], index: 0, kind: input, shape index: {}]   ;;  %s2693_s1 = inlined_call_operand.hbm [shape: f32[128,512], index: 1, kind: input, shape index: {}]   ;;  %s2694_s2 = inlined_call_operand.hbm [shape: f32[1,128,512], index: 2, kind: input, shape index: {}]   ;;  %s2695_s3 = inlined_call_operand.hbm [shape: f32[2,128,512], index: 3, kind: input, shape index: {}]   ;;  %s2696_s4 = inlined_call_operand.vmem [shape: f32[2,512], index: 4, kind: input, shape index: {}]   ;;  %s2697_s5 = inlined_call_operand.hbm [shape: f32[128,128], index: 5, kind: input, shape index: {}]   ;;  %s2698_s6 = inlined_call_operand.vmem [shape: f32[1,128], index: 6, kind: input, shape index: {}]   ;;  %s2699_s7 = inlined_call_operand.hbm [shape: f32[8,8,128], index: 7, kind: output, shape index: {0}]   ;;  %s2700_s8 = inlined_call_operand.hbm [shape: f32[2,8,128], index: 8, kind: output, shape index: {1}]   ;;  %s2701_s9 = inlined_call_operand.hbm [shape: f32[2,8,128], index: 9, kind: output, shape index: {2}]  }
   0x1   :  { %16 = vsyncpa [#allocation10], 0 }
   0x2   :  { %17 = vsyncpa [#allocation13], 0 }
   0x3   :  { %18 = vsyncpa [#allocation8], 0 }
   0x4   :  { %19 = vsyncpa [#allocation17], 0  ;;  %s2294_s30 = smov [#allocation9]   ;;  %s2060_s13 = scalar_lea.hbm %s2693_s1, 8192 }
   0x5   :  { %s37_s10 = sshll.u32 %s2294_s30, 4  ;;  %p2061_p0 = scmp.ne.s32.totalorder %s2693_s1, %s2060_s13  ;;  %s38_s10 = int_to_ptr.vmem [resolvable:$true] %s37_s10 }
   0x6   :  { %p2064_p1 = scmp.lt.u32.totalorder %s2060_s13, %s2693_s1 }
   0x8   :  { %p2066_p2 = pnand %p2064_p1, %p2061_p0 }
   0xa   :  { %2069 = shalt.err (!%p2066_p2)
}
   0xb   :  { %s2070_s18 = scalar_lea.vmem %s38_s10, 8192  ;;  %p2075_p4 = scmp.lt.s32.totalorder %s38_s10, %s38_s10 }
   0xc   :  { %p2071_p3 = scmp.ne.s32.totalorder %s38_s10, %s2070_s18  ;;  %p2076_p5 = scmp.lt.s32.totalorder %s2070_s18, %s2070_s18 }
   0xe   :  { %p2077_p6 = por %p2076_p5, %p2075_p4 }
  0x10   :  { %p2078_p7 = pnand %p2077_p6, %p2071_p3 }
  0x12   :  { %2081 = shalt.err (!%p2078_p7)
}
  0x13   :  { %s2295_s19 = smov 512   ;;  %s2296_s20 = smov 32  }
  0x14   :  { %43 = dma.hbm_to_vmem [thread:$0]  %s2693_s1, 8192, %s38_s10, [#allocation10], %s2295_s19, %s2295_s19, %s2296_s20  }
  0x15   :  { %s2297_s23 = smov [#allocation12]   ;;  %s2298_s25 = smov [#allocation6]  }
  0x16   :  { %s61_s24 = sshll.u32 %s2297_s23, 4  ;;  %s25_s26 = sshll.u32 %s2298_s25, 4  ;;  %s62_s24 = int_to_ptr.vmem [resolvable:$true] %s61_s24  ;;  %s26_s26 = int_to_ptr.vmem [resolvable:$true] %s25_s26 }
  0x17   :  { %s2082_s29 = scalar_lea.hbm %s2695_s3, 16384 }
  0x18   :  { %p2083_p8 = scmp.ne.s32.totalorder %s2695_s3, %s2082_s29  ;;  %p2086_p9 = scmp.lt.u32.totalorder %s2082_s29, %s2695_s3 }
  0x1a   :  { %p2088_p10 = pnand %p2086_p9, %p2083_p8 }
  0x1c   :  { %2091 = shalt.err (!%p2088_p10)
}
  0x1d   :  { %s2092_s1 = scalar_lea.vmem %s62_s24, 16384  ;;  %p2097_p12 = scmp.lt.s32.totalorder %s62_s24, %s62_s24 }
  0x1e   :  { %p2093_p11 = scmp.ne.s32.totalorder %s62_s24, %s2092_s1  ;;  %p2098_p13 = scmp.lt.s32.totalorder %s2092_s1, %s2092_s1 }
  0x20   :  { %p2099_p0 = por %p2098_p13, %p2097_p12 }
  0x22   :  { %p2100_p1 = pnand %p2099_p0, %p2093_p11 }
  0x24   :  { %2103 = shalt.err (!%p2100_p1)
}
  0x25   :  { %67 = dma.hbm_to_vmem [thread:$0]  %s2695_s3, 16384, %s62_s24, [#allocation13], %s2295_s19, %s2295_s19, %s2296_s20  }
  0x26   :  { %s2104_s17 = scalar_lea.hbm %s2692_s0, 1024 }
  0x27   :  { %p2105_p2 = scmp.ne.s32.totalorder %s2692_s0, %s2104_s17  ;;  %p2108_p3 = scmp.lt.u32.totalorder %s2104_s17, %s2692_s0 }
  0x29   :  { %p2110_p4 = pnand %p2108_p3, %p2105_p2 }
  0x2b   :  { %2113 = shalt.err (!%p2110_p4)
}
  0x2c   :  { %s2114_s25 = scalar_lea.vmem %s26_s26, 1024  ;;  %p2119_p6 = scmp.lt.s32.totalorder %s26_s26, %s26_s26 }
  0x2d   :  { %p2115_p5 = scmp.ne.s32.totalorder %s26_s26, %s2114_s25  ;;  %p2120_p7 = scmp.lt.s32.totalorder %s2114_s25, %s2114_s25 }
  0x2f   :  { %p2121_p8 = por %p2120_p7, %p2119_p6 }
  0x31   :  { %p2122_p9 = pnand %p2121_p8, %p2115_p5 }
  0x33   :  { %2125 = shalt.err (!%p2122_p9)
}
  0x34   :  { %s2299_s3 = smov 128   ;;  %s2300_s24 = smov 8  }
  0x35   :  { %31 = dma.hbm_to_vmem [thread:$0]  %s2692_s0, 1024, %s26_s26, [#allocation7], %s2299_s3, %s2299_s3, %s2300_s24  }
  0x36   :  { %s2301_s29 = smov [#allocation11]   ;;  %s2302_s11 = smov [#allocation14]  }
  0x37   :  { %s49_s30 = sshll.u32 %s2301_s29, 4  ;;  %s75_s12 = sshll.u32 %s2302_s11, 4  ;;  %s50_s30 = int_to_ptr.vmem [resolvable:$true] %s49_s30  ;;  %s76_s12 = int_to_ptr.vmem [resolvable:$true] %s75_s12 }
  0x38   :  { %s2126_s10 = scalar_lea.hbm %s2694_s2, 8192 }
  0x39   :  { %p2127_p10 = scmp.ne.s32.totalorder %s2694_s2, %s2126_s10  ;;  %p2130_p11 = scmp.lt.u32.totalorder %s2126_s10, %s2694_s2 }
  0x3b   :  { %p2132_p12 = pnand %p2130_p11, %p2127_p10 }
  0x3d   :  { %2135 = shalt.err (!%p2132_p12)
}
  0x3e   :  { %s2136_s0 = scalar_lea.vmem %s50_s30, 8192  ;;  %p2141_p0 = scmp.lt.s32.totalorder %s50_s30, %s50_s30 }
  0x3f   :  { %p2137_p13 = scmp.ne.s32.totalorder %s50_s30, %s2136_s0  ;;  %p2142_p1 = scmp.lt.s32.totalorder %s2136_s0, %s2136_s0 }
  0x41   :  { %p2143_p2 = por %p2142_p1, %p2141_p0 }
  0x43   :  { %p2144_p3 = pnand %p2143_p2, %p2137_p13 }
  0x45   :  { %2147 = shalt.err (!%p2144_p3)
}
  0x46   :  { %55 = dma.hbm_to_vmem [thread:$0]  %s2694_s2, 8192, %s50_s30, [#allocation10], %s2295_s19, %s2295_s19, %s2296_s20  }
  0x47   :  { %s2148_s23 = scalar_lea.hbm %s2697_s5, 2048 }
  0x48   :  { %p2149_p4 = scmp.ne.s32.totalorder %s2697_s5, %s2148_s23  ;;  %p2152_p5 = scmp.lt.u32.totalorder %s2148_s23, %s2697_s5 }
  0x4a   :  { %p2154_p6 = pnand %p2152_p5, %p2149_p4 }
  0x4c   :  { %2157 = shalt.err (!%p2154_p6)
}
  0x4d   :  { %s2158_s11 = scalar_lea.vmem %s76_s12, 2048  ;;  %p2163_p8 = scmp.lt.s32.totalorder %s76_s12, %s76_s12 }
  0x4e   :  { %p2159_p7 = scmp.ne.s32.totalorder %s76_s12, %s2158_s11  ;;  %p2164_p9 = scmp.lt.s32.totalorder %s2158_s11, %s2158_s11 }
  0x50   :  { %p2165_p10 = por %p2164_p9, %p2163_p8 }
  0x52   :  { %p2166_p11 = pnand %p2165_p10, %p2159_p7 }
  0x54   :  { %2169 = shalt.err (!%p2166_p11)
}
  0x55   :  { %81 = dma.hbm_to_vmem [thread:$0]  %s2697_s5, 2048, %s76_s12, [#allocation13], %s2299_s3, %s2299_s3, %s2300_s24  }
  0x56   :  { %2260 = dma.done.wait [#allocation7], 1024  }
  0x57   :  { %2261 = vsyncadd [#allocation7], 4294966272 }
  0x58   :  { %2262 = dma.done.wait [#allocation10], 16384  }
  0x59   :  { %2263 = vsyncadd [#allocation10], 4294950912 }
  0x5a   :  { %2264 = dma.done.wait [#allocation13], 18432  }
  0x5b   :  { %2265 = vsyncadd [#allocation13], 4294948864  ;;  %v2303_v0 = vmov 0.0   ;;  %v117_v1 = vld [vmem:[#allocation9 + $0x8] sm:$0xff]  ;;  %v119_v3 = vld [vmem:[#allocation9 + $0x18] sm:$0xff]  ;;  %s2515_s30 = smov 0  }
  0x5c   :  { %103 = vst [vmem:[#allocation2] sm:$0xff] %v2303_v0  ;;  %104 = vst [vmem:[#allocation2 + $0x8] sm:$0xff] %v2303_v0  ;;  %266 = vmatprep.mubr.f32.mxu0 %v2303_v0  ;;  %379 = vmatprep.mubr.f32.mxu1 %v2303_v0  ;;  %v121_v2 = vld [vmem:[#allocation9 + $0x28] sm:$0xff]  ;;  %v123_v5 = vld [vmem:[#allocation9 + $0x38] sm:$0xff] }
  0x5d   :  { %105 = vst [vmem:[#allocation3] sm:$0xff] %v2303_v0  ;;  %106 = vst [vmem:[#allocation3 + $0x8] sm:$0xff] %v2303_v0  ;;  %v1661_v4 = vpack.c.bf16 %v121_v2, %v117_v1  ;;  %v116_v6 = vld [vmem:[#allocation9] sm:$0xff]  ;;  %v1693_v8 = vpack.c.bf16 %v123_v5, %v119_v3  ;;  %v118_v10 = vld [vmem:[#allocation9 + $0x10] sm:$0xff] }
  0x5e   :  { %v120_v7 = vld [vmem:[#allocation9 + $0x20] sm:$0xff]  ;;  %v122_v11 = vld [vmem:[#allocation9 + $0x30] sm:$0xff]  ;;  %v125_v12 = vld [vmem:[#allocation9 + $0x48] sm:$0xff] }
  0x5f   :  { %v1663_v9 = vpack.c.bf16 %v120_v7, %v116_v6  ;;  %1662 = vmatprep.subr.bf16.mxu0 %v1661_v4  ;;  %v1695_v13 = vpack.c.bf16 %v122_v11, %v118_v10  ;;  %v129_v14 = vld [vmem:[#allocation9 + $0x68] sm:$0xff]  ;;  %v127_v15 = vld [vmem:[#allocation9 + $0x58] sm:$0xff]  ;;  %1694 = vmatprep.subr.bf16.mxu1 %v1693_v8  ;;  %v124_v19 = vld [vmem:[#allocation9 + $0x40] sm:$0xff] }
  0x60   :  { %v131_v16 = vld [vmem:[#allocation9 + $0x78] sm:$0xff]  ;;  %v1665_v17 = vpack.c.bf16 %v129_v14, %v125_v12  ;;  %v128_v20 = vld [vmem:[#allocation9 + $0x60] sm:$0xff]  ;;  %v126_v21 = vld [vmem:[#allocation9 + $0x50] sm:$0xff] }
  0x61   :  { %1664 = vmatpush1.bf16.msra.mxu0 %v1663_v9  ;;  %v1697_v18 = vpack.c.bf16 %v131_v16, %v127_v15  ;;  %1696 = vmatpush1.bf16.msra.mxu1 %v1695_v13  ;;  %v1667_v22 = vpack.c.bf16 %v128_v20, %v124_v19  ;;  %v130_v23 = vld [vmem:[#allocation9 + $0x70] sm:$0xff]  ;;  %v133_v24 = vld [vmem:[#allocation9 + $0x88] sm:$0xff]  ;;  %v135_v28 = vld [vmem:[#allocation9 + $0x98] sm:$0xff] }
  0x62   :  { %v137_v25 = vld [vmem:[#allocation9 + $0xa8] sm:$0xff]  ;;  %1666 = vmatprep.subr.bf16.mxu0 %v1665_v17  ;;  %v1699_v26 = vpack.c.bf16 %v130_v23, %v126_v21  ;;  %v139_v29 = vld [vmem:[#allocation9 + $0xb8] sm:$0xff]  ;;  %v132_v30 = vld [vmem:[#allocation9 + $0x80] sm:$0xff] }
  0x63   :  { %1698 = vmatprep.subr.bf16.mxu1 %v1697_v18  ;;  %v1669_v27 = vpack.c.bf16 %v137_v25, %v133_v24  ;;  %v1701_v31 = vpack.c.bf16 %v139_v29, %v135_v28  ;;  %v136_v32 = vld [vmem:[#allocation9 + $0xa0] sm:$0xff]  ;;  %v134_v33 = vld [vmem:[#allocation9 + $0x90] sm:$0xff]  ;;  %v141_v36 = vld [vmem:[#allocation9 + $0xc8] sm:$0xff] }
  0x64   :  { %v138_v34 = vld [vmem:[#allocation9 + $0xb0] sm:$0xff]  ;;  %v1671_v35 = vpack.c.bf16 %v136_v32, %v132_v30  ;;  %v145_v37 = vld [vmem:[#allocation9 + $0xe8] sm:$0xff]  ;;  %v143_v38 = vld [vmem:[#allocation9 + $0xd8] sm:$0xff] }
  0x65   :  { %1668 = vmatpush1.bf16.msra.mxu0 %v1667_v22  ;;  %1700 = vmatpush1.bf16.msra.mxu1 %v1699_v26  ;;  %v1703_v39 = vpack.c.bf16 %v138_v34, %v134_v33  ;;  %v1673_v40 = vpack.c.bf16 %v145_v37, %v141_v36  ;;  %v147_v41 = vld [vmem:[#allocation9 + $0xf8] sm:$0xff]  ;;  %v140_v42 = vld [vmem:[#allocation9 + $0xc0] sm:$0xff]  ;;  %v142_v45 = vld [vmem:[#allocation9 + $0xd0] sm:$0xff] }
  0x66   :  { %1670 = vmatprep.subr.bf16.mxu0 %v1669_v27  ;;  %v144_v43 = vld [vmem:[#allocation9 + $0xe0] sm:$0xff]  ;;  %1702 = vmatprep.subr.bf16.mxu1 %v1701_v31  ;;  %v1705_v44 = vpack.c.bf16 %v147_v41, %v143_v38  ;;  %v146_v46 = vld [vmem:[#allocation9 + $0xf0] sm:$0xff]  ;;  %v149_v47 = vld [vmem:[#allocation9 + $0x108] sm:$0xff] }
  0x67   :  { %v153_v48 = vld [vmem:[#allocation9 + $0x128] sm:$0xff]  ;;  %v151_v49 = vld [vmem:[#allocation9 + $0x118] sm:$0xff]  ;;  %v1675_v51 = vpack.c.bf16 %v144_v43, %v140_v42  ;;  %v1707_v52 = vpack.c.bf16 %v146_v46, %v142_v45  ;;  %v148_v54 = vld [vmem:[#allocation9 + $0x100] sm:$0xff]  ;;  %v182_v42 = vlaneseq }
  0x68   :  { %v155_v50 = vld [vmem:[#allocation9 + $0x138] sm:$0xff]  ;;  %v1677_v53 = vpack.c.bf16 %v153_v48, %v149_v47  ;;  %v152_v55 = vld [vmem:[#allocation9 + $0x120] sm:$0xff]  ;;  %v150_v56 = vld [vmem:[#allocation9 + $0x110] sm:$0xff] }
  0x69   :  { %1672 = vmatpush1.bf16.msra.mxu0 %v1671_v35  ;;  %1704 = vmatpush1.bf16.msra.mxu1 %v1703_v39  ;;  %v1709_v57 = vpack.c.bf16 %v155_v50, %v151_v49  ;;  %v154_v58 = vld [vmem:[#allocation9 + $0x130] sm:$0xff]  ;;  %v157_v59 = vld [vmem:[#allocation9 + $0x148] sm:$0xff]  ;;  %v159_v61 = vld [vmem:[#allocation9 + $0x158] sm:$0xff]  ;;  %v1679_v63 = vpack.c.bf16 %v152_v55, %v148_v54  ;;  %v2454_v43 = vshrl.u32 %v182_v42, 7 }
  0x6a   :  { %1674 = vmatprep.subr.bf16.mxu0 %v1673_v40  ;;  %1706 = vmatprep.subr.bf16.mxu1 %v1705_v44  ;;  %v161_v60 = vld [vmem:[#allocation9 + $0x168] sm:$0xff]  ;;  %v163_v62 = vld [vmem:[#allocation9 + $0x178] sm:$0xff]  ;;  %v1711_v1 = vpack.c.bf16 %v154_v58, %v150_v56  ;;  %v156_v3 = vld [vmem:[#allocation9 + $0x140] sm:$0xff] }
  0x6b   :  { %v1681_v2 = vpack.c.bf16 %v161_v60, %v157_v59  ;;  %v160_v4 = vld [vmem:[#allocation9 + $0x160] sm:$0xff]  ;;  %v158_v5 = vld [vmem:[#allocation9 + $0x150] sm:$0xff]  ;;  %v1713_v6 = vpack.c.bf16 %v163_v62, %v159_v61  ;;  %v165_v8 = vld [vmem:[#allocation9 + $0x188] sm:$0xff]  ;;  %v184_v44 = vsub.s32 0, %v2454_v43  ;;  %v192_v46 = vsub.s32 2, %v2454_v43 }
  0x6c   :  { %v162_v7 = vld [vmem:[#allocation9 + $0x170] sm:$0xff]  ;;  %v169_v9 = vld [vmem:[#allocation9 + $0x1a8] sm:$0xff]  ;;  %v167_v10 = vld [vmem:[#allocation9 + $0x198] sm:$0xff]  ;;  %v1683_v12 = vpack.c.bf16 %v160_v4, %v156_v3  ;;  %v188_v47 = vsub.s32 1, %v2454_v43  ;;  %v196_v48 = vsub.s32 3, %v2454_v43 }
  0x6d   :  { %1676 = vmatpush1.bf16.msra.mxu0 %v1675_v51  ;;  %1708 = vmatpush1.bf16.msra.mxu1 %v1707_v52  ;;  %v171_v11 = vld [vmem:[#allocation9 + $0x1b8] sm:$0xff]  ;;  %v1715_v13 = vpack.c.bf16 %v162_v7, %v158_v5  ;;  %v1685_v14 = vpack.c.bf16 %v169_v9, %v165_v8  ;;  %v164_v15 = vld [vmem:[#allocation9 + $0x180] sm:$0xff]  ;;  %v166_v17 = vld [vmem:[#allocation9 + $0x190] sm:$0xff] }
  0x6e   :  { %1678 = vmatprep.subr.bf16.mxu0 %v1677_v53  ;;  %1710 = vmatprep.subr.bf16.mxu1 %v1709_v57  ;;  %v168_v16 = vld [vmem:[#allocation9 + $0x1a0] sm:$0xff]  ;;  %v1717_v18 = vpack.c.bf16 %v171_v11, %v167_v10  ;;  %v170_v19 = vld [vmem:[#allocation9 + $0x1b0] sm:$0xff]  ;;  %v173_v20 = vld [vmem:[#allocation9 + $0x1c8] sm:$0xff] }
  0x6f   :  { %v177_v21 = vld [vmem:[#allocation9 + $0x1e8] sm:$0xff]  ;;  %v175_v22 = vld [vmem:[#allocation9 + $0x1d8] sm:$0xff]  ;;  %v1687_v24 = vpack.c.bf16 %v168_v16, %v164_v15  ;;  %v1719_v25 = vpack.c.bf16 %v170_v19, %v166_v17  ;;  %v172_v27 = vld [vmem:[#allocation9 + $0x1c0] sm:$0xff] }
  0x70   :  { %v179_v23 = vld [vmem:[#allocation9 + $0x1f8] sm:$0xff]  ;;  %v1689_v26 = vpack.c.bf16 %v177_v21, %v173_v20  ;;  %v176_v28 = vld [vmem:[#allocation9 + $0x1e0] sm:$0xff]  ;;  %v174_v30 = vld [vmem:[#allocation9 + $0x1d0] sm:$0xff] }
  0x71   :  { %1680 = vmatpush1.bf16.msra.mxu0 %v1679_v63  ;;  %1712 = vmatpush1.bf16.msra.mxu1 %v1711_v1  ;;  %v1721_v29 = vpack.c.bf16 %v179_v23, %v175_v22  ;;  %v178_v31 = vld [vmem:[#allocation9 + $0x1f0] sm:$0xff]  ;;  %v1691_v32 = vpack.c.bf16 %v176_v28, %v172_v27  ;;  %v108_v34 = vld [vmem:[#allocation6] sm:$0xff]  ;;  %v109_v35 = vld [vmem:[#allocation6 + $0x8] sm:$0xff] }
  0x72   :  { %1682 = vmatprep.subr.bf16.mxu0 %v1681_v2  ;;  %1714 = vmatprep.subr.bf16.mxu1 %v1713_v6  ;;  %v1723_v33 = vpack.c.bf16 %v178_v31, %v174_v30  ;;  %v110_v36 = vld [vmem:[#allocation6 + $0x10] sm:$0xff]  ;;  %v111_v37 = vld [vmem:[#allocation6 + $0x18] sm:$0xff]  ;;  %v112_v38 = vld [vmem:[#allocation6 + $0x20] sm:$0xff] }
  0x73   :  { %v113_v39 = vld [vmem:[#allocation6 + $0x28] sm:$0xff]  ;;  %v114_v40 = vld [vmem:[#allocation6 + $0x30] sm:$0xff]  ;;  %v115_v41 = vld [vmem:[#allocation6 + $0x38] sm:$0xff] }
  0x74   :  { %v180_v45 = vld [vmem:[%s2696_s4] ss:$2 sm:$0xf] }
  0x75   :  { %1684 = vmatpush1.bf16.msra.mxu0 %v1683_v12  ;;  %1716 = vmatpush1.bf16.msra.mxu1 %v1715_v13  ;;  %v2465_v49 = vrot.slane %v180_v45, %v184_v44  ;;  %v2469_v50 = vrot.slane %v180_v45, %v192_v46  ;;  %v2473_v51 = vrot.slane %v180_v45, %v188_v47 }
  0x76   :  { %1686 = vmatprep.subr.bf16.mxu0 %v1685_v14  ;;  %1718 = vmatprep.subr.bf16.mxu1 %v1717_v18  ;;  %v2477_v52 = vrot.slane %v180_v45, %v196_v48 }
  0x79   :  { %1688 = vmatpush1.bf16.msra.mxu0 %v1687_v24  ;;  %1720 = vmatpush1.bf16.msra.mxu1 %v1719_v25 }
  0x7a   :  { %1690 = vmatprep.subr.bf16.mxu0 %v1689_v26  ;;  %1722 = vmatprep.subr.bf16.mxu1 %v1721_v29 }
  0x7d   :  { %1692 = vmatpush1.bf16.msra.mxu0 %v1691_v32  ;;  %1724 = vmatpush1.bf16.msra.mxu1 %v1723_v33 }
  0x80   :  { %267 = vmatmul.mubr.f32.vlgmr.msra.gmra.mrb[0].mxu0 %v108_v34  ;;  %380 = vmatmul.mubr.f32.vlgmr.msra.gmra.mrb[0].mxu1 %v108_v34 }
  0x81   :  { %272 = vmatprep.mubr.f32.mxu0 %v2303_v0  ;;  %385 = vmatprep.mubr.f32.mxu1 %v2303_v0 }
  0x84   :  { %273 = vmatmul.mubr.f32.gmra.mrb[2].mxu0 %v109_v35  ;;  %386 = vmatmul.mubr.f32.gmra.mrb[2].mxu1 %v109_v35 }
  0x85   :  { %278 = vmatprep.mubr.f32.mxu0 %v2303_v0  ;;  %391 = vmatprep.mubr.f32.mxu1 %v2303_v0 }
  0x88   :  { %279 = vmatmul.mubr.f32.gmra.mrb[4].mxu0 %v110_v36  ;;  %392 = vmatmul.mubr.f32.gmra.mrb[4].mxu1 %v110_v36 }
  0x89   :  { %284 = vmatprep.mubr.f32.mxu0 %v2303_v0  ;;  %397 = vmatprep.mubr.f32.mxu1 %v2303_v0 }
  0x8c   :  { %285 = vmatmul.mubr.f32.gmra.mrb[6].mxu0 %v111_v37  ;;  %398 = vmatmul.mubr.f32.gmra.mrb[6].mxu1 %v111_v37 }
  0x8d   :  { %290 = vmatprep.mubr.f32.mxu0 %v2303_v0  ;;  %403 = vmatprep.mubr.f32.mxu1 %v2303_v0 }
  0x90   :  { %291 = vmatmul.mubr.f32.gmra.mrb[8].mxu0 %v112_v38  ;;  %404 = vmatmul.mubr.f32.gmra.mrb[8].mxu1 %v112_v38 }
  0x91   :  { %296 = vmatprep.mubr.f32.mxu0 %v2303_v0  ;;  %409 = vmatprep.mubr.f32.mxu1 %v2303_v0 }
  0x94   :  { %297 = vmatmul.mubr.f32.gmra.mrb[10].mxu0 %v113_v39  ;;  %410 = vmatmul.mubr.f32.gmra.mrb[10].mxu1 %v113_v39 }
  0x95   :  { %302 = vmatprep.mubr.f32.mxu0 %v2303_v0  ;;  %415 = vmatprep.mubr.f32.mxu1 %v2303_v0 }
  0x98   :  { %303 = vmatmul.mubr.f32.gmra.mrb[12].mxu0 %v114_v40  ;;  %416 = vmatmul.mubr.f32.gmra.mrb[12].mxu1 %v114_v40 }
  0x99   :  { %308 = vmatprep.mubr.f32.mxu0 %v2303_v0  ;;  %421 = vmatprep.mubr.f32.mxu1 %v2303_v0 }
  0x9c   :  { %309 = vmatmul.mubr.f32.gmra.mrb[14].mxu0 %v115_v41  ;;  %422 = vmatmul.mubr.f32.gmra.mrb[14].mxu1 %v115_v41 }
 0x153   :  { %v268_v53 = vpop.f32.mrb[0].mxu0  ;;  %v381_v55 = vpop.f32.mrb[0].mxu1 }
 0x154   :  { %v269_v54 = vadd.f32 %v268_v53, %v2465_v49  ;;  %v270_v56 = vpop.f32.mrb[1].mxu0  ;;  %v382_v57 = vadd.f32 %v381_v55, %v2469_v50  ;;  %v383_v59 = vpop.f32.mrb[1].mxu1 }
 0x155   :  { %v271_v58 = vadd.f32 %v270_v56, %v2473_v51  ;;  %v384_v60 = vadd.f32 %v383_v59, %v2477_v52 }
 0x156   :  { %428 = vst [vmem:[#allocation5] sm:$0xff] %v269_v54  ;;  %430 = vst [vmem:[#allocation5 + $0x10] sm:$0xff] %v382_v57 }
 0x157   :  { %429 = vst [vmem:[#allocation5 + $0x8] sm:$0xff] %v271_v58  ;;  %v274_v61 = vpop.f32.mrb[2].mxu0  ;;  %431 = vst [vmem:[#allocation5 + $0x18] sm:$0xff] %v384_v60  ;;  %v387_v63 = vpop.f32.mrb[2].mxu1 }
 0x158   :  { %v275_v62 = vadd.f32 %v274_v61, %v2465_v49  ;;  %v276_v1 = vpop.f32.mrb[3].mxu0  ;;  %v388_v2 = vadd.f32 %v387_v63, %v2469_v50  ;;  %v389_v4 = vpop.f32.mrb[3].mxu1  ;;  %v2511_v63 = vmov 0.0  }
 0x159   :  { %v277_v3 = vadd.f32 %v276_v1, %v2473_v51  ;;  %v390_v5 = vadd.f32 %v389_v4, %v2477_v52  ;;  %v2513_v1 = vmov 0.0  }
 0x15a   :  { %432 = vst [vmem:[#allocation5 + $0x20] sm:$0xff] %v275_v62  ;;  %434 = vst [vmem:[#allocation5 + $0x30] sm:$0xff] %v388_v2 }
 0x15b   :  { %433 = vst [vmem:[#allocation5 + $0x28] sm:$0xff] %v277_v3  ;;  %v280_v6 = vpop.f32.mrb[4].mxu0  ;;  %435 = vst [vmem:[#allocation5 + $0x38] sm:$0xff] %v390_v5  ;;  %v393_v8 = vpop.f32.mrb[4].mxu1 }
 0x15c   :  { %v281_v7 = vadd.f32 %v280_v6, %v2465_v49  ;;  %v282_v9 = vpop.f32.mrb[5].mxu0  ;;  %v394_v10 = vadd.f32 %v393_v8, %v2469_v50  ;;  %v395_v12 = vpop.f32.mrb[5].mxu1 }
 0x15d   :  { %v283_v11 = vadd.f32 %v282_v9, %v2473_v51  ;;  %v396_v13 = vadd.f32 %v395_v12, %v2477_v52 }
 0x15e   :  { %436 = vst [vmem:[#allocation5 + $0x40] sm:$0xff] %v281_v7  ;;  %438 = vst [vmem:[#allocation5 + $0x50] sm:$0xff] %v394_v10 }
 0x15f   :  { %437 = vst [vmem:[#allocation5 + $0x48] sm:$0xff] %v283_v11  ;;  %v286_v14 = vpop.f32.mrb[6].mxu0  ;;  %439 = vst [vmem:[#allocation5 + $0x58] sm:$0xff] %v396_v13  ;;  %v399_v16 = vpop.f32.mrb[6].mxu1 }
 0x160   :  { %v287_v15 = vadd.f32 %v286_v14, %v2465_v49  ;;  %v288_v17 = vpop.f32.mrb[7].mxu0  ;;  %v400_v18 = vadd.f32 %v399_v16, %v2469_v50  ;;  %v401_v20 = vpop.f32.mrb[7].mxu1 }
 0x161   :  { %v289_v19 = vadd.f32 %v288_v17, %v2473_v51  ;;  %v402_v21 = vadd.f32 %v401_v20, %v2477_v52 }
 0x162   :  { %440 = vst [vmem:[#allocation5 + $0x60] sm:$0xff] %v287_v15  ;;  %442 = vst [vmem:[#allocation5 + $0x70] sm:$0xff] %v400_v18 }
 0x163   :  { %441 = vst [vmem:[#allocation5 + $0x68] sm:$0xff] %v289_v19  ;;  %v292_v22 = vpop.f32.mrb[8].mxu0  ;;  %443 = vst [vmem:[#allocation5 + $0x78] sm:$0xff] %v402_v21  ;;  %v405_v24 = vpop.f32.mrb[8].mxu1 }
 0x164   :  { %v293_v23 = vadd.f32 %v292_v22, %v2465_v49  ;;  %v294_v25 = vpop.f32.mrb[9].mxu0  ;;  %v406_v26 = vadd.f32 %v405_v24, %v2469_v50  ;;  %v407_v28 = vpop.f32.mrb[9].mxu1 }
 0x165   :  { %v295_v27 = vadd.f32 %v294_v25, %v2473_v51  ;;  %v408_v29 = vadd.f32 %v407_v28, %v2477_v52 }
 0x166   :  { %444 = vst [vmem:[#allocation5 + $0x80] sm:$0xff] %v293_v23  ;;  %446 = vst [vmem:[#allocation5 + $0x90] sm:$0xff] %v406_v26 }
 0x167   :  { %445 = vst [vmem:[#allocation5 + $0x88] sm:$0xff] %v295_v27  ;;  %v298_v30 = vpop.f32.mrb[10].mxu0  ;;  %447 = vst [vmem:[#allocation5 + $0x98] sm:$0xff] %v408_v29  ;;  %v411_v32 = vpop.f32.mrb[10].mxu1 }
 0x168   :  { %v299_v31 = vadd.f32 %v298_v30, %v2465_v49  ;;  %v300_v33 = vpop.f32.mrb[11].mxu0  ;;  %v412_v34 = vadd.f32 %v411_v32, %v2469_v50  ;;  %v413_v36 = vpop.f32.mrb[11].mxu1 }
 0x169   :  { %v301_v35 = vadd.f32 %v300_v33, %v2473_v51  ;;  %v414_v37 = vadd.f32 %v413_v36, %v2477_v52 }
 0x16a   :  { %448 = vst [vmem:[#allocation5 + $0xa0] sm:$0xff] %v299_v31  ;;  %450 = vst [vmem:[#allocation5 + $0xb0] sm:$0xff] %v412_v34 }
 0x16b   :  { %449 = vst [vmem:[#allocation5 + $0xa8] sm:$0xff] %v301_v35  ;;  %v304_v38 = vpop.f32.mrb[12].mxu0  ;;  %451 = vst [vmem:[#allocation5 + $0xb8] sm:$0xff] %v414_v37  ;;  %v417_v40 = vpop.f32.mrb[12].mxu1 }
 0x16c   :  { %v305_v39 = vadd.f32 %v304_v38, %v2465_v49  ;;  %v306_v41 = vpop.f32.mrb[13].mxu0  ;;  %v418_v42 = vadd.f32 %v417_v40, %v2469_v50  ;;  %v419_v53 = vpop.f32.mrb[13].mxu1 }
 0x16d   :  { %v307_v45 = vadd.f32 %v306_v41, %v2473_v51  ;;  %v420_v54 = vadd.f32 %v419_v53, %v2477_v52 }
 0x16e   :  { %452 = vst [vmem:[#allocation5 + $0xc0] sm:$0xff] %v305_v39  ;;  %454 = vst [vmem:[#allocation5 + $0xd0] sm:$0xff] %v418_v42 }
 0x16f   :  { %453 = vst [vmem:[#allocation5 + $0xc8] sm:$0xff] %v307_v45  ;;  %v310_v55 = vpop.f32.mrb[14].mxu0  ;;  %455 = vst [vmem:[#allocation5 + $0xd8] sm:$0xff] %v420_v54  ;;  %v423_v57 = vpop.f32.mrb[14].mxu1 }
 0x170   :  { %v311_v56 = vadd.f32 %v310_v55, %v2465_v49  ;;  %v312_v58 = vpop.f32.mrb[15].mxu0  ;;  %v424_v59 = vadd.f32 %v423_v57, %v2469_v50  ;;  %v425_v61 = vpop.f32.mrb[15].mxu1 }
 0x171   :  { %v313_v60 = vadd.f32 %v312_v58, %v2473_v51  ;;  %v426_v62 = vadd.f32 %v425_v61, %v2477_v52 }
 0x172   :  { %456 = vst [vmem:[#allocation5 + $0xe0] sm:$0xff] %v311_v56  ;;  %458 = vst [vmem:[#allocation5 + $0xf0] sm:$0xff] %v424_v59 }
 0x173   :  { %457 = vst [vmem:[#allocation5 + $0xe8] sm:$0xff] %v313_v60  ;;  %459 = vst [vmem:[#allocation5 + $0xf8] sm:$0xff] %v426_v62 }
 0x174 LB: > { %v478_v49 = vld [vmem:[#allocation12 + $0x8] sm:$0xff]  ;;  %v477_v51 = vld [vmem:[#allocation12] sm:$0xff]  ;;  %v2304_v5 = vmov 0.0   ;;  %v480_v17 = vld [vmem:[#allocation12 + $0x18] sm:$0xff]  ;;  %s1591_s12 = sshll.u32 %s2280_s30, 5  ;;  %p712_p12 = scmp.lt.s32.totalorder %s2280_s30, 8  ;;  %s2280_s30 = sphi %s2515_s30, %s467_s30   ;;  %v2276_v1 = vphi %v2513_v1, %v2703_v1   ;;  %v2272_v63 = vphi %v2511_v63, %v2702_v63  }
 0x175   : > { %v482_v50 = vld [vmem:[#allocation12 + $0x28] sm:$0xff]  ;;  %v481_v2 = vld [vmem:[#allocation12 + $0x20] sm:$0xff]  ;;  %605 = vmatprep.mubr.f32.mxu0 %v2304_v5  ;;  %676 = vmatprep.mubr.f32.mxu1 %v2304_v5  ;;  %v484_v18 = vld [vmem:[#allocation12 + $0x38] sm:$0xff]  ;;  %s472_s13 = scalar_lea.vmem [#allocation5], %s1591_s12  ;;  %s1582_s10 = sshll.u32 %s2280_s30, 3 }
 0x176   : > { %v1725_v52 = vpack.c.bf16 %v482_v50, %v478_v49  ;;  %v486_v3 = vld [vmem:[#allocation12 + $0x48] sm:$0xff]  ;;  %v1727_v6 = vpack.c.bf16 %v481_v2, %v477_v51  ;;  %v485_v8 = vld [vmem:[#allocation12 + $0x40] sm:$0xff]  ;;  %v1757_v20 = vpack.c.bf16 %v484_v18, %v480_v17  ;;  %v479_v21 = vld [vmem:[#allocation12 + $0x10] sm:$0xff]  ;;  %s713_s1 = scalar_select %p712_p12, 1, 0 }
 0x177   : > { %v490_v4 = vld [vmem:[#allocation12 + $0x68] sm:$0xff]  ;;  %v489_v9 = vld [vmem:[#allocation12 + $0x60] sm:$0xff]  ;;  %v483_v22 = vld [vmem:[#allocation12 + $0x30] sm:$0xff]  ;;  %s719_s14 = scalar_lea.vmem [#allocation4], %s1582_s10  ;;  %s467_s30 = sadd.s32 1, %s2280_s30  }
 0x178   : > { %v1729_v7 = vpack.c.bf16 %v490_v4, %v486_v3  ;;  %v494_v10 = vld [vmem:[#allocation12 + $0x88] sm:$0xff]  ;;  %1726 = vmatprep.subr.bf16.mxu0 %v1725_v52  ;;  %v1731_v12 = vpack.c.bf16 %v489_v9, %v485_v8  ;;  %v493_v13 = vld [vmem:[#allocation12 + $0x80] sm:$0xff]  ;;  %v1759_v23 = vpack.c.bf16 %v483_v22, %v479_v21  ;;  %1758 = vmatprep.subr.bf16.mxu1 %v1757_v20  ;;  %v488_v25 = vld [vmem:[#allocation12 + $0x58] sm:$0xff]  ;;  %p464_p13 = scmp.ge.s32.totalorder %s467_s30, 8  }
 0x179   : > { %v498_v11 = vld [vmem:[#allocation12 + $0xa8] sm:$0xff]  ;;  %1728 = vmatpush1.bf16.msra.mxu0 %v1727_v6  ;;  %v497_v14 = vld [vmem:[#allocation12 + $0xa0] sm:$0xff]  ;;  %v492_v26 = vld [vmem:[#allocation12 + $0x78] sm:$0xff] }
 0x17a   : > { %1730 = vmatprep.subr.bf16.mxu0 %v1729_v7  ;;  %v1733_v15 = vpack.c.bf16 %v498_v11, %v494_v10  ;;  %v502_v16 = vld [vmem:[#allocation12 + $0xc8] sm:$0xff]  ;;  %v1735_v24 = vpack.c.bf16 %v497_v14, %v493_v13  ;;  %v487_v27 = vld [vmem:[#allocation12 + $0x50] sm:$0xff]  ;;  %v501_v29 = vld [vmem:[#allocation12 + $0xc0] sm:$0xff]  ;;  %1760 = vmatpush1.bf16.msra.mxu1 %v1759_v23  ;;  %v1761_v31 = vpack.c.bf16 %v492_v26, %v488_v25 }
 0x17b   : > { %v506_v19 = vld [vmem:[#allocation12 + $0xe8] sm:$0xff]  ;;  %v505_v30 = vld [vmem:[#allocation12 + $0xe0] sm:$0xff]  ;;  %v491_v32 = vld [vmem:[#allocation12 + $0x70] sm:$0xff] }
 0x17c   : > { %v1737_v28 = vpack.c.bf16 %v506_v19, %v502_v16  ;;  %v510_v33 = vld [vmem:[#allocation12 + $0x108] sm:$0xff]  ;;  %v1763_v35 = vpack.c.bf16 %v491_v32, %v487_v27  ;;  %v496_v36 = vld [vmem:[#allocation12 + $0x98] sm:$0xff]  ;;  %1762 = vmatprep.subr.bf16.mxu1 %v1761_v31  ;;  %v495_v38 = vld [vmem:[#allocation12 + $0x90] sm:$0xff]  ;;  %v1739_v40 = vpack.c.bf16 %v505_v30, %v501_v29 }
 0x17d   : > { %1732 = vmatpush1.bf16.msra.mxu0 %v1731_v12  ;;  %v514_v34 = vld [vmem:[#allocation12 + $0x128] sm:$0xff]  ;;  %v500_v37 = vld [vmem:[#allocation12 + $0xb8] sm:$0xff]  ;;  %v499_v39 = vld [vmem:[#allocation12 + $0xb0] sm:$0xff] }
 0x17e   : > { %1734 = vmatprep.subr.bf16.mxu0 %v1733_v15  ;;  %v509_v41 = vld [vmem:[#allocation12 + $0x100] sm:$0xff]  ;;  %v1765_v45 = vpack.c.bf16 %v500_v37, %v496_v36  ;;  %v1741_v53 = vpack.c.bf16 %v514_v34, %v510_v33  ;;  %1764 = vmatpush1.bf16.msra.mxu1 %v1763_v35  ;;  %v518_v54 = vld [vmem:[#allocation12 + $0x148] sm:$0xff]  ;;  %v1767_v55 = vpack.c.bf16 %v499_v39, %v495_v38  ;;  %v504_v56 = vld [vmem:[#allocation12 + $0xd8] sm:$0xff] }
 0x17f   : > { %v513_v42 = vld [vmem:[#allocation12 + $0x120] sm:$0xff]  ;;  %v508_v57 = vld [vmem:[#allocation12 + $0xf8] sm:$0xff]  ;;  %v522_v58 = vld [vmem:[#allocation12 + $0x168] sm:$0xff] }
 0x180   : > { %1766 = vmatprep.subr.bf16.mxu1 %v1765_v45  ;;  %v1769_v59 = vpack.c.bf16 %v508_v57, %v504_v56  ;;  %v503_v60 = vld [vmem:[#allocation12 + $0xd0] sm:$0xff]  ;;  %v1743_v62 = vpack.c.bf16 %v513_v42, %v509_v41  ;;  %v512_v49 = vld [vmem:[#allocation12 + $0x118] sm:$0xff]  ;;  %v1745_v51 = vpack.c.bf16 %v522_v58, %v518_v54  ;;  %v517_v52 = vld [vmem:[#allocation12 + $0x140] sm:$0xff] }
 0x181   : > { %1736 = vmatpush1.bf16.msra.mxu0 %v1735_v24  ;;  %v507_v61 = vld [vmem:[#allocation12 + $0xf0] sm:$0xff]  ;;  %v516_v50 = vld [vmem:[#allocation12 + $0x138] sm:$0xff]  ;;  %v521_v2 = vld [vmem:[#allocation12 + $0x160] sm:$0xff] }
 0x182   : > { %1738 = vmatprep.subr.bf16.mxu0 %v1737_v28  ;;  %1768 = vmatpush1.bf16.msra.mxu1 %v1767_v55  ;;  %v526_v3 = vld [vmem:[#allocation12 + $0x188] sm:$0xff]  ;;  %v1771_v4 = vpack.c.bf16 %v507_v61, %v503_v60  ;;  %v1773_v6 = vpack.c.bf16 %v516_v50, %v512_v49  ;;  %v511_v7 = vld [vmem:[#allocation12 + $0x110] sm:$0xff]  ;;  %v520_v9 = vld [vmem:[#allocation12 + $0x158] sm:$0xff]  ;;  %v1747_v11 = vpack.c.bf16 %v521_v2, %v517_v52 }
 0x183   : > { %v530_v5 = vld [vmem:[#allocation12 + $0x1a8] sm:$0xff]  ;;  %1770 = vmatprep.subr.bf16.mxu1 %v1769_v59  ;;  %v515_v8 = vld [vmem:[#allocation12 + $0x130] sm:$0xff]  ;;  %v524_v10 = vld [vmem:[#allocation12 + $0x178] sm:$0xff] }
 0x184   : > { %v1749_v12 = vpack.c.bf16 %v530_v5, %v526_v3  ;;  %v525_v13 = vld [vmem:[#allocation12 + $0x180] sm:$0xff]  ;;  %v534_v15 = vld [vmem:[#allocation12 + $0x1c8] sm:$0xff]  ;;  %v1775_v16 = vpack.c.bf16 %v515_v8, %v511_v7  ;;  %v1777_v18 = vpack.c.bf16 %v524_v10, %v520_v9  ;;  %v519_v19 = vld [vmem:[#allocation12 + $0x150] sm:$0xff]  ;;  %v714_v5 = vstv %s713_s1 }
 0x185   : > { %1740 = vmatpush1.bf16.msra.mxu0 %v1739_v40  ;;  %v529_v14 = vld [vmem:[#allocation12 + $0x1a0] sm:$0xff]  ;;  %v538_v17 = vld [vmem:[#allocation12 + $0x1e8] sm:$0xff]  ;;  %v523_v20 = vld [vmem:[#allocation12 + $0x170] sm:$0xff]  ;;  %vm715_vm0 = vcmp.eq.s32.totalorder %v714_v5, 1 }
 0x186   : > { %1742 = vmatprep.subr.bf16.mxu0 %v1741_v53  ;;  %1772 = vmatpush1.bf16.msra.mxu1 %v1771_v4  ;;  %v528_v21 = vld [vmem:[#allocation12 + $0x198] sm:$0xff]  ;;  %v1751_v23 = vpack.c.bf16 %v529_v14, %v525_v13  ;;  %v1753_v24 = vpack.c.bf16 %v538_v17, %v534_v15  ;;  %v533_v25 = vld [vmem:[#allocation12 + $0x1c0] sm:$0xff]  ;;  %v1779_v27 = vpack.c.bf16 %v523_v20, %v519_v19  ;;  %v527_v29 = vld [vmem:[#allocation12 + $0x190] sm:$0xff] }
 0x187   : > { %1774 = vmatprep.subr.bf16.mxu1 %v1773_v6  ;;  %v532_v22 = vld [vmem:[#allocation12 + $0x1b8] sm:$0xff]  ;;  %v537_v26 = vld [vmem:[#allocation12 + $0x1e0] sm:$0xff]  ;;  %v531_v30 = vld [vmem:[#allocation12 + $0x1b0] sm:$0xff] }
 0x188   : > { %v1781_v28 = vpack.c.bf16 %v532_v22, %v528_v21  ;;  %v536_v31 = vld [vmem:[#allocation12 + $0x1d8] sm:$0xff]  ;;  %v1755_v33 = vpack.c.bf16 %v537_v26, %v533_v25  ;;  %v1783_v34 = vpack.c.bf16 %v531_v30, %v527_v29  ;;  %v535_v36 = vld [vmem:[#allocation12 + $0x1d0] sm:$0xff]  ;;  %v473_v39 = vld [vmem:[%s472_s13] sm:$0xff] }
 0x189   : > { %1744 = vmatpush1.bf16.msra.mxu0 %v1743_v62  ;;  %v540_v32 = vld [vmem:[#allocation12 + $0x1f8] sm:$0xff]  ;;  %v539_v37 = vld [vmem:[#allocation12 + $0x1f0] sm:$0xff]  ;;  %v474_v40 = vld [vmem:[%s472_s13 + $0x8] sm:$0xff] }
 0x18a   : > { %1746 = vmatprep.subr.bf16.mxu0 %v1745_v51  ;;  %1776 = vmatpush1.bf16.msra.mxu1 %v1775_v16  ;;  %v1785_v35 = vpack.c.bf16 %v540_v32, %v536_v31  ;;  %v1787_v38 = vpack.c.bf16 %v539_v37, %v535_v36  ;;  %v476_v56 = vld [vmem:[%s472_s13 + $0x18] sm:$0xff]  ;;  %v475_v60 = vld [vmem:[%s472_s13 + $0x10] sm:$0xff]  ;;  %v732_v16 = vld [vmem:[#allocation11 + $0x8] sm:$0xff] (%p464_p13) }
 0x18b   : > { %1778 = vmatprep.subr.bf16.mxu1 %v1777_v18  ;;  %v736_v17 = vld [vmem:[#allocation11 + $0x28] sm:$0xff] (%p464_p13)  ;;  %v734_v18 = vld [vmem:[#allocation11 + $0x18] sm:$0xff] (%p464_p13)  ;;  %v731_v20 = vld [vmem:[#allocation11] sm:$0xff] (%p464_p13) }
 0x18c   :  { %v738_v19 = vld [vmem:[#allocation11 + $0x38] sm:$0xff] (%p464_p13)  ;;  %v735_v21 = vld [vmem:[#allocation11 + $0x20] sm:$0xff] (%p464_p13)  ;;  %v737_v25 = vld [vmem:[#allocation11 + $0x30] sm:$0xff] (%p464_p13) }
 0x18d   : > { %1748 = vmatpush1.bf16.msra.mxu0 %v1747_v11  ;;  %v1821_v22 = vpack.c.bf16 (%p464_p13), %v738_v19, %v734_v18  ;;  %v740_v26 = vld [vmem:[#allocation11 + $0x48] sm:$0xff] (%p464_p13)  ;;  %v746_v29 = vld [vmem:[#allocation11 + $0x78] sm:$0xff] (%p464_p13)  ;;  %v739_v32 = vld [vmem:[#allocation11 + $0x40] sm:$0xff] (%p464_p13) }
 0x18e   : > { %1750 = vmatprep.subr.bf16.mxu0 %v1749_v12  ;;  %1780 = vmatpush1.bf16.msra.mxu1 %v1779_v27  ;;  %v745_v36 = vld [vmem:[#allocation11 + $0x70] sm:$0xff] (%p464_p13)  ;;  %v748_v37 = vld [vmem:[#allocation11 + $0x88] sm:$0xff] (%p464_p13)  ;;  %v774_v18 = vld [vmem:[#allocation11 + $0x158] sm:$0xff] (%p464_p13) }
 0x18f   : > { %1782 = vmatprep.subr.bf16.mxu1 %v1781_v28  ;;  %v742_v28 = vld [vmem:[#allocation11 + $0x58] sm:$0xff] (%p464_p13)  ;;  %v768_v5 = vld [vmem:[#allocation11 + $0x128] sm:$0xff] (%p464_p13) }
 0x190   :  { %v1825_v31 = vpack.c.bf16 (%p464_p13), %v746_v29, %v742_v28  ;;  %v782_v28 = vld [vmem:[#allocation11 + $0x198] sm:$0xff] (%p464_p13) }
 0x191   : > { %1752 = vmatpush1.bf16.msra.mxu0 %v1751_v23  ;;  %v1791_v23 = vpack.c.bf16 (%p464_p13), %v735_v21, %v731_v20  ;;  %v786_v29 = vld [vmem:[#allocation11 + $0x1b8] sm:$0xff] (%p464_p13) }
 0x192   : > { %1754 = vmatprep.subr.bf16.mxu0 %v1753_v24  ;;  %1784 = vmatpush1.bf16.msra.mxu1 %v1783_v34  ;;  %v733_v24 = vld [vmem:[#allocation11 + $0x10] sm:$0xff] (%p464_p13) }
 0x193   : > { %1786 = vmatprep.subr.bf16.mxu1 %v1785_v35  ;;  %v1823_v27 = vpack.c.bf16 (%p464_p13), %v737_v25, %v733_v24  ;;  %v741_v34 = vld [vmem:[#allocation11 + $0x50] sm:$0xff] (%p464_p13) }
 0x194   :  { %v773_v24 = vld [vmem:[#allocation11 + $0x150] sm:$0xff] (%p464_p13) }
 0x195   : > { %1756 = vmatpush1.bf16.msra.mxu0 %v1755_v33  ;;  %v743_v33 = vld [vmem:[#allocation11 + $0x60] sm:$0xff] (%p464_p13) }
 0x196   : > { %1788 = vmatpush1.bf16.msra.mxu1 %v1787_v38  ;;  %v1795_v35 = vpack.c.bf16 (%p464_p13), %v743_v33, %v739_v32  ;;  %v752_v38 = vld [vmem:[#allocation11 + $0xa8] sm:$0xff] (%p464_p13)  ;;  %v779_v33 = vld [vmem:[#allocation11 + $0x180] sm:$0xff] (%p464_p13) }
 0x197   :  { %1822 = vmatprep.subr.bf16.mxu1 (%p464_p13), %v1821_v22  ;;  %v771_v22 = vld [vmem:[#allocation11 + $0x140] sm:$0xff] (%p464_p13) }
 0x198   : > { %606 = vmatmul.mubr.f32.vlgmr.msra.gmra.mrb[0].mxu0 %v2276_v1 }
 0x199   : > { %677 = vmatmul.mubr.f32.vlgmr.msra.gmra.mrb[0].mxu1 %v2276_v1  ;;  %882 = vmatprep.mubr.f32.mxu0 (%p464_p13), %v2303_v0 }
 0x19a   :  { %995 = vmatprep.mubr.f32.mxu1 (%p464_p13), %v2303_v0  ;;  %1824 = vmatpush1.bf16.msra.mxu1 (%p464_p13), %v1823_v27  ;;  %v780_v27 = vld [vmem:[#allocation11 + $0x188] sm:$0xff] (%p464_p13) }
 0x19b   :  { %1826 = vmatprep.subr.bf16.mxu1 (%p464_p13), %v1825_v31 }
 0x26b   : > { %v607_v41 = vpop.f32.mrb[0].mxu0 }
 0x26c   : > { %v683_v42 = vadd.f32 %v607_v41, %v473_v39  ;;  %v609_v45 = vpop.f32.mrb[1].mxu0  ;;  %v678_v57 = vpop.f32.mrb[0].mxu1  ;;  %v1827_v39 = vpack.c.bf16 (%p464_p13), %v745_v36, %v741_v34  ;;  %v750_v41 = vld [vmem:[#allocation11 + $0x98] sm:$0xff] (%p464_p13)  ;;  %v783_v34 = vld [vmem:[#allocation11 + $0x1a0] sm:$0xff] (%p464_p13)  ;;  %v1845_v36 = vpack.c.bf16 (%p464_p13), %v786_v29, %v782_v28 }
 0x26d   : > { %v684_v53 = vadd.f32 %v609_v45, %v474_v40  ;;  %v680_v58 = vpop.f32.mrb[1].mxu1  ;;  %v685_v62 = vadd.f32 %v678_v57, %v475_v60  ;;  %v1797_v40 = vpack.c.bf16 (%p464_p13), %v752_v38, %v748_v37  ;;  %v747_v45 = vld [vmem:[#allocation11 + $0x80] sm:$0xff] (%p464_p13)  ;;  %v758_v60 = vld [vmem:[#allocation11 + $0xd8] sm:$0xff] (%p464_p13)  ;;  %v785_v37 = vld [vmem:[#allocation11 + $0x1b0] sm:$0xff] (%p464_p13) }
 0x26e   : > { %v1579_v54 = vmul.f32 -1.442695, %v683_v42  ;;  %v686_v59 = vadd.f32 %v680_v58, %v476_v56  ;;  %v754_v42 = vld [vmem:[#allocation11 + $0xb8] sm:$0xff] (%p464_p13)  ;;  %v753_v56 = vld [vmem:[#allocation11 + $0xb0] sm:$0xff] (%p464_p13)  ;;  %v756_v58 = vld [vmem:[#allocation11 + $0xc8] sm:$0xff] (%p464_p13)  ;;  %1828 = vmatpush1.bf16.msra.mxu1 (%p464_p13), %v1827_v39 }
 0x26f   : > { %v1580_v55 = vmul.f32 -1.442695, %v684_v53  ;;  %v1829_v53 = vpack.c.bf16 (%p464_p13), %v754_v42, %v750_v41  ;;  %v788_v38 = vld [vmem:[#allocation11 + $0x1c8] sm:$0xff] (%p464_p13)  ;;  %v794_v41 = vld [vmem:[#allocation11 + $0x1f8] sm:$0xff] (%p464_p13)  ;;  %v1815_v42 = vpack.c.bf16 (%p464_p13), %v783_v34, %v779_v33 }
 0x270   : > { %2028 = vpow2.f32 %v1579_v54  ;;  %v1581_v61 = vmul.f32 -1.442695, %v686_v59  ;;  %v751_v54 = vld [vmem:[#allocation11 + $0xa0] sm:$0xff] (%p464_p13)  ;;  %v760_v59 = vld [vmem:[#allocation11 + $0xe8] sm:$0xff] (%p464_p13) }
 0x271   : > { %2030 = vpow2.f32 %v1580_v55  ;;  %v749_v55 = vld [vmem:[#allocation11 + $0x90] sm:$0xff] (%p464_p13)  ;;  %v1799_v57 = vpack.c.bf16 (%p464_p13), %v751_v54, %v747_v45  ;;  %1830 = vmatprep.subr.bf16.mxu1 (%p464_p13), %v1829_v53  ;;  %v792_v39 = vld [vmem:[#allocation11 + $0x1e8] sm:$0xff] (%p464_p13)  ;;  %v787_v54 = vld [vmem:[#allocation11 + $0x1c0] sm:$0xff] (%p464_p13) }
 0x272   : > { %2032 = vpow2.f32 %v1581_v61  ;;  %v1831_v61 = vpack.c.bf16 (%p464_p13), %v753_v56, %v749_v55  ;;  %v1817_v53 = vpack.c.bf16 (%p464_p13), %v792_v39, %v788_v38  ;;  %v791_v55 = vld [vmem:[#allocation11 + $0x1e0] sm:$0xff] (%p464_p13) }
 0x273   : > { %2034 = vtanh.f32 %v685_v62  ;;  %v1801_v62 = vpack.c.bf16 (%p464_p13), %v760_v59, %v756_v58  ;;  %v793_v58 = vld [vmem:[#allocation11 + $0x1f0] sm:$0xff] (%p464_p13)  ;;  %v1819_v59 = vpack.c.bf16 (%p464_p13), %v791_v55, %v787_v54 }
 0x274   :  { %1832 = vmatpush1.bf16.msra.mxu1 (%p464_p13), %v1831_v61 }
 0x27a   : > { %v2029_v49 = vpop.eup %2028 }
 0x27b   : > { %v2031_v50 = vpop.eup %2030  ;;  %v690_v51 = vadd.f32 1.0, %v2029_v49  ;;  %v762_v49 = vld [vmem:[#allocation11 + $0xf8] sm:$0xff] (%p464_p13) }
 0x27c   : > { %v696_v52 = vadd.f32 1.0, %v2031_v50  ;;  %v2033_v2 = vpop.eup %2032  ;;  %v755_v50 = vld [vmem:[#allocation11 + $0xc0] sm:$0xff] (%p464_p13) }
 0x27d   : > { %2036 = vrcp.f32 %v690_v51  ;;  %v2035_v3 = vpop.eup %2034  ;;  %v703_v6 = vadd.f32 1.0, %v2033_v2  ;;  %v759_v51 = vld [vmem:[#allocation11 + $0xe0] sm:$0xff] (%p464_p13)  ;;  %v757_v2 = vld [vmem:[#allocation11 + $0xd0] sm:$0xff] (%p464_p13) }
 0x27e   : > { %2038 = vrcp.f32 %v696_v52  ;;  %v1833_v52 = vpack.c.bf16 (%p464_p13), %v762_v49, %v758_v60 }
 0x27f   : > { %2040 = vrcp.f32 %v703_v6  ;;  %v766_v6 = vld [vmem:[#allocation11 + $0x118] sm:$0xff] (%p464_p13) }
 0x280   :  { %1834 = vmatprep.subr.bf16.mxu1 (%p464_p13), %v1833_v52 }
 0x287   : > { %v2037_v4 = vpop.eup %2036 }
 0x288   : > { %v2039_v7 = vpop.eup %2038  ;;  %v707_v8 = vmul.f32 %v2037_v4, %v2035_v3  ;;  %v761_v3 = vld [vmem:[#allocation11 + $0xf0] sm:$0xff] (%p464_p13)  ;;  %v764_v4 = vld [vmem:[#allocation11 + $0x108] sm:$0xff] (%p464_p13) }
 0x289   : > { %v706_v9 = vmul.f32 %v2272_v63, %v2039_v7  ;;  %v2041_v12 = vpop.eup %2040  ;;  %v770_v7 = vld [vmem:[#allocation11 + $0x138] sm:$0xff] (%p464_p13) }
 0x28b   : > { %v708_v10 = vadd.f32 %v707_v8, %v706_v9  ;;  %v1803_v8 = vpack.c.bf16 (%p464_p13), %v759_v51, %v755_v50  ;;  %v1835_v9 = vpack.c.bf16 (%p464_p13), %v761_v3, %v757_v2 }
 0x28d   : > { %2042 = vtanh.f32 %v708_v10  ;;  %v717_v11 = vsel %vm715_vm0, %v708_v10, %v2272_v63   ;;  %v1805_v10 = vpack.c.bf16 (%p464_p13), %v768_v5, %v764_v4  ;;  %1836 = vmatpush1.bf16.msra.mxu1 (%p464_p13), %v1835_v9  ;;  %v2557_v4 = vld [vmem:[#allocation2 + $0x8] sm:$0xff] (%p464_p13)   ;;  %v2559_v5 = vld [vmem:[#allocation3 + $0x8] sm:$0xff] (%p464_p13)  }
 0x28e   : > { %v2702_v63 = vmov %v717_v11  ;;  %722 = vst [vmem:[#allocation3] sm:$0xff] (%p464_p13), %v717_v11  ;;  %v763_v11 = vld [vmem:[#allocation11 + $0x100] sm:$0xff] (%p464_p13) }
 0x28f   :  { %v744_v63 = vld [vmem:[#allocation11 + $0x68] sm:$0xff] (%p464_p13) }
 0x290   :  { %v1793_v30 = vpack.c.bf16 (%p464_p13), %v744_v63, %v740_v26  ;;  %v777_v26 = vld [vmem:[#allocation11 + $0x170] sm:$0xff] (%p464_p13)  ;;  %v784_v63 = vld [vmem:[#allocation11 + $0x1a8] sm:$0xff] (%p464_p13) }
 0x291   :  { %v1843_v31 = vpack.c.bf16 (%p464_p13), %v777_v26, %v773_v24  ;;  %v1813_v32 = vpack.c.bf16 (%p464_p13), %v784_v63, %v780_v27 }
 0x295   :  { %466 = sbr.rel (!%p464_p13) target bundleno = 372 (0x174), region = 114 }
 0x297   : > { %v2043_v13 = vpop.eup %2042 }
 0x298   : > { %v710_v14 = vmul.f32 %v2043_v13, %v2041_v12  ;;  %v767_v12 = vld [vmem:[#allocation11 + $0x120] sm:$0xff] (%p464_p13)  ;;  %v765_v13 = vld [vmem:[#allocation11 + $0x110] sm:$0xff] (%p464_p13) }
 0x299   :  { %v1807_v19 = vpack.c.bf16 (%p464_p13), %v767_v12, %v763_v11 }
 0x29a   : > { %v716_v15 = vsel %vm715_vm0, %v710_v14, %v2276_v1   ;;  %v1837_v14 = vpack.c.bf16 (%p464_p13), %v770_v7, %v766_v6  ;;  %v1583_v6 = vld [vmem:[%s2696_s4 + $0x1] ss:$2 sm:$0xf] (%p464_p13)  ;;  %s2618_s4 = smov (%p464_p13), 0  }
 0x29b   : > { %720 = vst [vmem:[%s719_s14] sm:$0xff] %v716_v15  ;;  %v2703_v1 = vmov %v716_v15  ;;  %721 = vst [vmem:[#allocation2] sm:$0xff] (%p464_p13), %v716_v15  ;;  %v769_v15 = vld [vmem:[#allocation11 + $0x130] sm:$0xff] (%p464_p13)  ;;  %v2566_v7 = vrot.slane (%p464_p13), %v1583_v6, %v184_v44  ;;  %v2578_v9 = vrot.slane (%p464_p13), %v1583_v6, %v196_v48 }
 0x29c   :  { %v1789_v1 = vpack.c.bf16 %v736_v17, %v732_v16  ;;  %v772_v16 = vld [vmem:[#allocation11 + $0x148] sm:$0xff]  ;;  %v1839_v20 = vpack.c.bf16 %v769_v15, %v765_v13  ;;  %1838 = vmatprep.subr.bf16.mxu1 %v1837_v14 }
 0x29d   :  { %v776_v17 = vld [vmem:[#allocation11 + $0x168] sm:$0xff] }
 0x29e   :  { %1790 = vmatprep.subr.bf16.mxu0 %v1789_v1  ;;  %v778_v1 = vld [vmem:[#allocation11 + $0x178] sm:$0xff]  ;;  %v1809_v21 = vpack.c.bf16 %v776_v17, %v772_v16  ;;  %1840 = vmatpush1.bf16.msra.mxu1 %v1839_v20 }
 0x29f   :  { %1792 = vmatpush1.bf16.msra.mxu0 %v1791_v23  ;;  %v775_v23 = vld [vmem:[#allocation11 + $0x160] sm:$0xff]  ;;  %v1841_v25 = vpack.c.bf16 %v778_v1, %v774_v18 }
 0x2a0   :  { %1794 = vmatprep.subr.bf16.mxu0 %v1793_v30  ;;  %v1811_v30 = vpack.c.bf16 %v775_v23, %v771_v22 }
 0x2a1   :  { %1842 = vmatprep.subr.bf16.mxu1 %v1841_v25 }
 0x2a2   :  { %1844 = vmatpush1.bf16.msra.mxu1 %v1843_v31  ;;  %v723_v61 = vld [vmem:[#allocation4] sm:$0xff]  ;;  %v725_v49 = vld [vmem:[#allocation4 + $0x10] sm:$0xff]  ;;  %v726_v50 = vld [vmem:[#allocation4 + $0x18] sm:$0xff] }
 0x2a3   :  { %1796 = vmatpush1.bf16.msra.mxu0 %v1795_v35  ;;  %v781_v35 = vld [vmem:[#allocation11 + $0x190] sm:$0xff]  ;;  %1846 = vmatprep.subr.bf16.mxu1 %v1845_v36  ;;  %v727_v51 = vld [vmem:[#allocation4 + $0x20] sm:$0xff]  ;;  %v728_v52 = vld [vmem:[#allocation4 + $0x28] sm:$0xff] }
 0x2a4   :  { %1798 = vmatprep.subr.bf16.mxu0 %v1797_v40  ;;  %v790_v40 = vld [vmem:[#allocation11 + $0x1d8] sm:$0xff]  ;;  %v1847_v45 = vpack.c.bf16 %v785_v37, %v781_v35  ;;  %v729_v2 = vld [vmem:[#allocation4 + $0x30] sm:$0xff] }
 0x2a5   :  { %v1849_v56 = vpack.c.bf16 %v794_v41, %v790_v40  ;;  %v730_v3 = vld [vmem:[#allocation4 + $0x38] sm:$0xff] }
 0x2a6   :  { %1848 = vmatpush1.bf16.msra.mxu1 %v1847_v45 }
 0x2a7   :  { %1800 = vmatpush1.bf16.msra.mxu0 %v1799_v57  ;;  %v789_v57 = vld [vmem:[#allocation11 + $0x1d0] sm:$0xff]  ;;  %1850 = vmatprep.subr.bf16.mxu1 %v1849_v56 }
 0x2a8   :  { %1802 = vmatprep.subr.bf16.mxu0 %v1801_v62  ;;  %v1851_v60 = vpack.c.bf16 %v793_v58, %v789_v57  ;;  %v724_v62 = vld [vmem:[#allocation4 + $0x8] sm:$0xff] }
 0x2aa   :  { %1852 = vmatpush1.bf16.msra.mxu1 %v1851_v60 }
 0x2ab   :  { %1804 = vmatpush1.bf16.msra.mxu0 %v1803_v8  ;;  %v2570_v8 = vrot.slane %v1583_v6, %v192_v46 }
 0x2ac   :  { %1806 = vmatprep.subr.bf16.mxu0 %v1805_v10 }
 0x2ad   :  { %996 = vmatmul.mubr.f32.vlgmr.msra.gmra.mrb[0].mxu1 %v723_v61 }
 0x2ae   :  { %1001 = vmatprep.mubr.f32.mxu1 %v2303_v0 }
 0x2af   :  { %1808 = vmatpush1.bf16.msra.mxu0 %v1807_v19 }
 0x2b0   :  { %1810 = vmatprep.subr.bf16.mxu0 %v1809_v21 }
 0x2b1   :  { %1002 = vmatmul.mubr.f32.gmra.mrb[2].mxu1 %v724_v62 }
 0x2b2   :  { %1007 = vmatprep.mubr.f32.mxu1 %v2303_v0 }
 0x2b3   :  { %1812 = vmatpush1.bf16.msra.mxu0 %v1811_v30 }
 0x2b4   :  { %1814 = vmatprep.subr.bf16.mxu0 %v1813_v32 }
 0x2b5   :  { %1008 = vmatmul.mubr.f32.gmra.mrb[4].mxu1 %v725_v49 }
 0x2b6   :  { %1013 = vmatprep.mubr.f32.mxu1 %v2303_v0 }
 0x2b7   :  { %1816 = vmatpush1.bf16.msra.mxu0 %v1815_v42 }
 0x2b8   :  { %1818 = vmatprep.subr.bf16.mxu0 %v1817_v53 }
 0x2b9   :  { %1014 = vmatmul.mubr.f32.gmra.mrb[6].mxu1 %v726_v50 }
 0x2ba   :  { %1019 = vmatprep.mubr.f32.mxu1 %v2303_v0 }
 0x2bb   :  { %1820 = vmatpush1.bf16.msra.mxu0 %v1819_v59 }
 0x2bd   :  { %1020 = vmatmul.mubr.f32.gmra.mrb[8].mxu1 %v727_v51 }
 0x2be   :  { %883 = vmatmul.mubr.f32.vlgmr.msra.gmra.mrb[0].mxu0 %v723_v61  ;;  %1025 = vmatprep.mubr.f32.mxu1 %v2303_v0 }
 0x2bf   :  { %888 = vmatprep.mubr.f32.mxu0 %v2303_v0 }
 0x2c1   :  { %1026 = vmatmul.mubr.f32.gmra.mrb[10].mxu1 %v728_v52 }
 0x2c2   :  { %889 = vmatmul.mubr.f32.gmra.mrb[2].mxu0 %v724_v62  ;;  %1031 = vmatprep.mubr.f32.mxu1 %v2303_v0 }
 0x2c3   :  { %894 = vmatprep.mubr.f32.mxu0 %v2303_v0 }
 0x2c5   :  { %1032 = vmatmul.mubr.f32.gmra.mrb[12].mxu1 %v729_v2 }
 0x2c6   :  { %895 = vmatmul.mubr.f32.gmra.mrb[4].mxu0 %v725_v49  ;;  %1037 = vmatprep.mubr.f32.mxu1 %v2303_v0 }
 0x2c7   :  { %900 = vmatprep.mubr.f32.mxu0 %v2303_v0 }
 0x2c9   :  { %1038 = vmatmul.mubr.f32.gmra.mrb[14].mxu1 %v730_v3 }
 0x2ca   :  { %901 = vmatmul.mubr.f32.gmra.mrb[6].mxu0 %v726_v50 }
 0x2cb   :  { %906 = vmatprep.mubr.f32.mxu0 %v2303_v0 }
 0x2ce   :  { %907 = vmatmul.mubr.f32.gmra.mrb[8].mxu0 %v727_v51 }
 0x2cf   :  { %912 = vmatprep.mubr.f32.mxu0 %v2303_v0 }
 0x2d2   :  { %913 = vmatmul.mubr.f32.gmra.mrb[10].mxu0 %v728_v52 }
 0x2d3   :  { %918 = vmatprep.mubr.f32.mxu0 %v2303_v0 }
 0x2d6   :  { %919 = vmatmul.mubr.f32.gmra.mrb[12].mxu0 %v729_v2 }
 0x2d7   :  { %924 = vmatprep.mubr.f32.mxu0 %v2303_v0  ;;  %v2574_v0 = vrot.slane %v1583_v6, %v188_v47 }
 0x2da   :  { %925 = vmatmul.mubr.f32.gmra.mrb[14].mxu0 %v730_v3 }
 0x380   :  { %v997_v12 = vpop.f32.mrb[0].mxu1 }
 0x381   :  { %v998_v44 = vadd.f32 %v997_v12, %v2570_v8  ;;  %v999_v15 = vpop.f32.mrb[1].mxu1 }
 0x382   :  { %v1000_v46 = vadd.f32 %v999_v15, %v2578_v9 }
 0x383   :  { %1046 = vst [vmem:[#allocation5 + $0x10] sm:$0xff] %v998_v44 }
 0x384   :  { %1047 = vst [vmem:[#allocation5 + $0x18] sm:$0xff] %v1000_v46  ;;  %v1003_v48 = vpop.f32.mrb[2].mxu1 }
 0x385   :  { %v1004_v17 = vadd.f32 %v1003_v48, %v2570_v8  ;;  %v1005_v1 = vpop.f32.mrb[3].mxu1 }
 0x386   :  { %v1006_v19 = vadd.f32 %v1005_v1, %v2578_v9 }
 0x387   :  { %1050 = vst [vmem:[#allocation5 + $0x30] sm:$0xff] %v1004_v17 }
 0x388   :  { %1051 = vst [vmem:[#allocation5 + $0x38] sm:$0xff] %v1006_v19  ;;  %v1009_v22 = vpop.f32.mrb[4].mxu1 }
 0x389   :  { %v1010_v24 = vadd.f32 %v1009_v22, %v2570_v8  ;;  %v1011_v26 = vpop.f32.mrb[5].mxu1 }
 0x38a   :  { %v1012_v27 = vadd.f32 %v1011_v26, %v2578_v9 }
 0x38b   :  { %1054 = vst [vmem:[#allocation5 + $0x50] sm:$0xff] %v1010_v24 }
 0x38c   :  { %1055 = vst [vmem:[#allocation5 + $0x58] sm:$0xff] %v1012_v27  ;;  %v1015_v29 = vpop.f32.mrb[6].mxu1 }
 0x38d   :  { %v1016_v31 = vadd.f32 %v1015_v29, %v2570_v8  ;;  %v1017_v33 = vpop.f32.mrb[7].mxu1 }
 0x38e   :  { %v1018_v34 = vadd.f32 %v1017_v33, %v2578_v9 }
 0x38f   :  { %1058 = vst [vmem:[#allocation5 + $0x70] sm:$0xff] %v1016_v31 }
 0x390   :  { %1059 = vst [vmem:[#allocation5 + $0x78] sm:$0xff] %v1018_v34  ;;  %v1021_v37 = vpop.f32.mrb[8].mxu1 }
 0x391   :  { %v884_v10 = vpop.f32.mrb[0].mxu0  ;;  %v1022_v39 = vadd.f32 %v1021_v37, %v2570_v8  ;;  %v1023_v41 = vpop.f32.mrb[9].mxu1 }
 0x392   :  { %v885_v11 = vadd.f32 %v884_v10, %v2566_v7  ;;  %v886_v13 = vpop.f32.mrb[1].mxu0  ;;  %v1024_v42 = vadd.f32 %v1023_v41, %v2578_v9 }
 0x393   :  { %v887_v14 = vadd.f32 %v886_v13, %v2574_v0  ;;  %1062 = vst [vmem:[#allocation5 + $0x90] sm:$0xff] %v1022_v39 }
 0x394   :  { %1044 = vst [vmem:[#allocation5] sm:$0xff] %v885_v11  ;;  %1063 = vst [vmem:[#allocation5 + $0x98] sm:$0xff] %v1024_v42  ;;  %v1027_v54 = vpop.f32.mrb[10].mxu1 }
 0x395   :  { %1045 = vst [vmem:[#allocation5 + $0x8] sm:$0xff] %v887_v14  ;;  %v890_v47 = vpop.f32.mrb[2].mxu0  ;;  %v1028_v56 = vadd.f32 %v1027_v54, %v2570_v8  ;;  %v1029_v58 = vpop.f32.mrb[11].mxu1 }
 0x396   :  { %v891_v43 = vadd.f32 %v890_v47, %v2566_v7  ;;  %v892_v16 = vpop.f32.mrb[3].mxu0  ;;  %v1030_v59 = vadd.f32 %v1029_v58, %v2578_v9 }
 0x397   :  { %v893_v18 = vadd.f32 %v892_v16, %v2574_v0  ;;  %1066 = vst [vmem:[#allocation5 + $0xb0] sm:$0xff] %v1028_v56 }
 0x398   :  { %1048 = vst [vmem:[#allocation5 + $0x20] sm:$0xff] %v891_v43  ;;  %1067 = vst [vmem:[#allocation5 + $0xb8] sm:$0xff] %v1030_v59  ;;  %v1033_v62 = vpop.f32.mrb[12].mxu1 }
 0x399   :  { %1049 = vst [vmem:[#allocation5 + $0x28] sm:$0xff] %v893_v18  ;;  %v896_v20 = vpop.f32.mrb[4].mxu0  ;;  %v1034_v50 = vadd.f32 %v1033_v62, %v2570_v8  ;;  %v1035_v52 = vpop.f32.mrb[13].mxu1 }
 0x39a   :  { %v897_v21 = vadd.f32 %v896_v20, %v2566_v7  ;;  %v898_v23 = vpop.f32.mrb[5].mxu0  ;;  %v1036_v2 = vadd.f32 %v1035_v52, %v2578_v9 }
 0x39b   :  { %v899_v25 = vadd.f32 %v898_v23, %v2574_v0  ;;  %1070 = vst [vmem:[#allocation5 + $0xd0] sm:$0xff] %v1034_v50 }
 0x39c   :  { %1052 = vst [vmem:[#allocation5 + $0x40] sm:$0xff] %v897_v21  ;;  %1071 = vst [vmem:[#allocation5 + $0xd8] sm:$0xff] %v1036_v2  ;;  %v1039_v10 = vpop.f32.mrb[14].mxu1 }
 0x39d   :  { %1053 = vst [vmem:[#allocation5 + $0x48] sm:$0xff] %v899_v25  ;;  %v902_v63 = vpop.f32.mrb[6].mxu0  ;;  %v1040_v12 = vadd.f32 %v1039_v10, %v2570_v8  ;;  %v1041_v44 = vpop.f32.mrb[15].mxu1 }
 0x39e   :  { %v903_v28 = vadd.f32 %v902_v63, %v2566_v7  ;;  %v904_v30 = vpop.f32.mrb[7].mxu0  ;;  %v1042_v14 = vadd.f32 %v1041_v44, %v2578_v9 }
 0x39f   :  { %v905_v32 = vadd.f32 %v904_v30, %v2574_v0  ;;  %1074 = vst [vmem:[#allocation5 + $0xf0] sm:$0xff] %v1040_v12 }
 0x3a0   :  { %1056 = vst [vmem:[#allocation5 + $0x60] sm:$0xff] %v903_v28  ;;  %1075 = vst [vmem:[#allocation5 + $0xf8] sm:$0xff] %v1042_v14 }
 0x3a1   :  { %1057 = vst [vmem:[#allocation5 + $0x68] sm:$0xff] %v905_v32  ;;  %v908_v35 = vpop.f32.mrb[8].mxu0 }
 0x3a2   :  { %v909_v36 = vadd.f32 %v908_v35, %v2566_v7  ;;  %v910_v38 = vpop.f32.mrb[9].mxu0 }
 0x3a3   :  { %v911_v40 = vadd.f32 %v910_v38, %v2574_v0 }
 0x3a4   :  { %1060 = vst [vmem:[#allocation5 + $0x80] sm:$0xff] %v909_v36 }
 0x3a5   :  { %1061 = vst [vmem:[#allocation5 + $0x88] sm:$0xff] %v911_v40  ;;  %v914_v45 = vpop.f32.mrb[10].mxu0 }
 0x3a6   :  { %v915_v53 = vadd.f32 %v914_v45, %v2566_v7  ;;  %v916_v55 = vpop.f32.mrb[11].mxu0 }
 0x3a7   :  { %v917_v57 = vadd.f32 %v916_v55, %v2574_v0 }
 0x3a8   :  { %1064 = vst [vmem:[#allocation5 + $0xa0] sm:$0xff] %v915_v53 }
 0x3a9   :  { %1065 = vst [vmem:[#allocation5 + $0xa8] sm:$0xff] %v917_v57  ;;  %v920_v60 = vpop.f32.mrb[12].mxu0 }
 0x3aa   :  { %v921_v61 = vadd.f32 %v920_v60, %v2566_v7  ;;  %v922_v49 = vpop.f32.mrb[13].mxu0 }
 0x3ab   :  { %v923_v51 = vadd.f32 %v922_v49, %v2574_v0 }
 0x3ac   :  { %1068 = vst [vmem:[#allocation5 + $0xc0] sm:$0xff] %v921_v61 }
 0x3ad   :  { %1069 = vst [vmem:[#allocation5 + $0xc8] sm:$0xff] %v923_v51  ;;  %v926_v3 = vpop.f32.mrb[14].mxu0 }
 0x3ae   :  { %v927_v6 = vadd.f32 %v926_v3, %v2566_v7  ;;  %v928_v11 = vpop.f32.mrb[15].mxu0 }
 0x3af   :  { %v929_v13 = vadd.f32 %v928_v11, %v2574_v0 }
 0x3b0   :  { %1072 = vst [vmem:[#allocation5 + $0xe0] sm:$0xff] %v927_v6 }
 0x3b1   :  { %1073 = vst [vmem:[#allocation5 + $0xe8] sm:$0xff] %v929_v13 }
 0x3b2 LB: > { %v1097_v7 = vld [vmem:[#allocation12 + $0x208] sm:$0xff]  ;;  %v1096_v0 = vld [vmem:[#allocation12 + $0x200] sm:$0xff]  ;;  %v2305_v43 = vmov 0.0   ;;  %v1099_v25 = vld [vmem:[#allocation12 + $0x218] sm:$0xff]  ;;  %s1592_s17 = sshll.u32 %s2292_s4, 5  ;;  %p1331_p0 = scmp.lt.s32.totalorder %s2292_s4, 8  ;;  %s2292_s4 = sphi %s2618_s4, %s1085_s4   ;;  %v2288_v4 = vphi %v2557_v4, %v2705_v4   ;;  %v2284_v5 = vphi %v2559_v5, %v2704_v5  }
 0x3b3   : > { %v1101_v8 = vld [vmem:[#allocation12 + $0x228] sm:$0xff]  ;;  %v1100_v15 = vld [vmem:[#allocation12 + $0x220] sm:$0xff]  ;;  %1224 = vmatprep.mubr.f32.mxu0 %v2305_v43  ;;  %1295 = vmatprep.mubr.f32.mxu1 %v2305_v43  ;;  %v1103_v26 = vld [vmem:[#allocation12 + $0x238] sm:$0xff]  ;;  %s1090_s0 = scalar_lea.vmem [#allocation5], %s1592_s17  ;;  %s1589_s18 = sshll.u32 %s2292_s4, 3 }
 0x3b4   : > { %v1853_v9 = vpack.c.bf16 %v1101_v8, %v1097_v7  ;;  %v1105_v46 = vld [vmem:[#allocation12 + $0x248] sm:$0xff]  ;;  %v1855_v48 = vpack.c.bf16 %v1100_v15, %v1096_v0  ;;  %v1104_v17 = vld [vmem:[#allocation12 + $0x240] sm:$0xff]  ;;  %v1885_v63 = vpack.c.bf16 %v1103_v26, %v1099_v25  ;;  %v1098_v28 = vld [vmem:[#allocation12 + $0x210] sm:$0xff]  ;;  %s1332_s26 = scalar_select %p1331_p0, 1, 0 }
 0x3b5   : > { %v1109_v47 = vld [vmem:[#allocation12 + $0x268] sm:$0xff]  ;;  %v1108_v18 = vld [vmem:[#allocation12 + $0x260] sm:$0xff]  ;;  %v1102_v29 = vld [vmem:[#allocation12 + $0x230] sm:$0xff]  ;;  %s1338_s21 = scalar_lea.vmem [#allocation4], %s1589_s18  ;;  %s1085_s4 = sadd.s32 1, %s2292_s4  }
 0x3b6   : > { %v1857_v16 = vpack.c.bf16 %v1109_v47, %v1105_v46  ;;  %v1113_v1 = vld [vmem:[#allocation12 + $0x288] sm:$0xff]  ;;  %1854 = vmatprep.subr.bf16.mxu0 %v1853_v9  ;;  %v1859_v20 = vpack.c.bf16 %v1108_v18, %v1104_v17  ;;  %v1112_v21 = vld [vmem:[#allocation12 + $0x280] sm:$0xff]  ;;  %v1887_v30 = vpack.c.bf16 %v1102_v29, %v1098_v28  ;;  %1886 = vmatprep.subr.bf16.mxu1 %v1885_v63  ;;  %v1107_v32 = vld [vmem:[#allocation12 + $0x258] sm:$0xff]  ;;  %p1082_p1 = scmp.ge.s32.totalorder %s1085_s4, 8  }
 0x3b7   : > { %v1117_v19 = vld [vmem:[#allocation12 + $0x2a8] sm:$0xff]  ;;  %1856 = vmatpush1.bf16.msra.mxu0 %v1855_v48  ;;  %v1116_v22 = vld [vmem:[#allocation12 + $0x2a0] sm:$0xff]  ;;  %v1111_v33 = vld [vmem:[#allocation12 + $0x278] sm:$0xff]  ;;  %s2306_s22 = smov (%p1082_p1), [#allocation16]  }
 0x3b8   : > { %1858 = vmatprep.subr.bf16.mxu0 %v1857_v16  ;;  %v1861_v23 = vpack.c.bf16 %v1117_v19, %v1113_v1  ;;  %v1121_v24 = vld [vmem:[#allocation12 + $0x2c8] sm:$0xff]  ;;  %v1863_v31 = vpack.c.bf16 %v1116_v22, %v1112_v21  ;;  %v1106_v34 = vld [vmem:[#allocation12 + $0x250] sm:$0xff]  ;;  %v1120_v36 = vld [vmem:[#allocation12 + $0x2c0] sm:$0xff]  ;;  %1888 = vmatpush1.bf16.msra.mxu1 %v1887_v30  ;;  %v1889_v38 = vpack.c.bf16 %v1111_v33, %v1107_v32  ;;  %s1514_s23 = sshll.u32 (%p1082_p1), %s2306_s22, 4  ;;  %s1515_s23 = int_to_ptr.vmem [resolvable:$true] %s1514_s23 }
 0x3b9   : > { %v1125_v27 = vld [vmem:[#allocation12 + $0x2e8] sm:$0xff]  ;;  %v1124_v37 = vld [vmem:[#allocation12 + $0x2e0] sm:$0xff]  ;;  %v1110_v39 = vld [vmem:[#allocation12 + $0x270] sm:$0xff]  ;;  %s2170_s25 = scalar_lea.vmem (%p1082_p1), %s1515_s23, 256  ;;  %p2175_p3 = scmp.lt.s32.totalorder (%p1082_p1), %s1515_s23, %s1515_s23 }
 0x3ba   : > { %v1865_v35 = vpack.c.bf16 %v1125_v27, %v1121_v24  ;;  %v1129_v40 = vld [vmem:[#allocation12 + $0x308] sm:$0xff]  ;;  %v1891_v42 = vpack.c.bf16 %v1110_v39, %v1106_v34  ;;  %v1115_v45 = vld [vmem:[#allocation12 + $0x298] sm:$0xff]  ;;  %1890 = vmatprep.subr.bf16.mxu1 %v1889_v38  ;;  %v1114_v54 = vld [vmem:[#allocation12 + $0x290] sm:$0xff]  ;;  %v1867_v56 = vpack.c.bf16 %v1124_v37, %v1120_v36  ;;  %p2171_p2 = scmp.ne.s32.totalorder (%p1082_p1), %s1515_s23, %s2170_s25  ;;  %p2176_p4 = scmp.lt.s32.totalorder (%p1082_p1), %s2170_s25, %s2170_s25 }
 0x3bb   : > { %1860 = vmatpush1.bf16.msra.mxu0 %v1859_v20  ;;  %v1133_v41 = vld [vmem:[#allocation12 + $0x328] sm:$0xff]  ;;  %v1119_v53 = vld [vmem:[#allocation12 + $0x2b8] sm:$0xff]  ;;  %v1118_v55 = vld [vmem:[#allocation12 + $0x2b0] sm:$0xff] }
 0x3bc   : > { %1862 = vmatprep.subr.bf16.mxu0 %v1861_v23  ;;  %v1128_v57 = vld [vmem:[#allocation12 + $0x300] sm:$0xff]  ;;  %v1893_v59 = vpack.c.bf16 %v1119_v53, %v1115_v45  ;;  %v1869_v60 = vpack.c.bf16 %v1133_v41, %v1129_v40  ;;  %1892 = vmatpush1.bf16.msra.mxu1 %v1891_v42  ;;  %v1137_v61 = vld [vmem:[#allocation12 + $0x348] sm:$0xff]  ;;  %v1895_v62 = vpack.c.bf16 %v1118_v55, %v1114_v54  ;;  %v1123_v49 = vld [vmem:[#allocation12 + $0x2d8] sm:$0xff]  ;;  %p2177_p5 = por (%p1082_p1), %p2176_p4, %p2175_p3 }
 0x3bd   : > { %v1132_v58 = vld [vmem:[#allocation12 + $0x320] sm:$0xff]  ;;  %v1127_v50 = vld [vmem:[#allocation12 + $0x2f8] sm:$0xff]  ;;  %v1141_v51 = vld [vmem:[#allocation12 + $0x368] sm:$0xff] }
 0x3be   : > { %1894 = vmatprep.subr.bf16.mxu1 %v1893_v59  ;;  %v1897_v52 = vpack.c.bf16 %v1127_v50, %v1123_v49  ;;  %v1122_v2 = vld [vmem:[#allocation12 + $0x2d0] sm:$0xff]  ;;  %v1871_v6 = vpack.c.bf16 %v1132_v58, %v1128_v57  ;;  %v1131_v10 = vld [vmem:[#allocation12 + $0x318] sm:$0xff]  ;;  %v1873_v12 = vpack.c.bf16 %v1141_v51, %v1137_v61  ;;  %v1136_v13 = vld [vmem:[#allocation12 + $0x340] sm:$0xff]  ;;  %p2178_p6 = pnand (%p1082_p1), %p2177_p5, %p2171_p2 }
 0x3bf   : > { %1864 = vmatpush1.bf16.msra.mxu0 %v1863_v31  ;;  %v1126_v3 = vld [vmem:[#allocation12 + $0x2f0] sm:$0xff]  ;;  %v1135_v11 = vld [vmem:[#allocation12 + $0x338] sm:$0xff]  ;;  %v1140_v44 = vld [vmem:[#allocation12 + $0x360] sm:$0xff] }
 0x3c0   : > { %1866 = vmatprep.subr.bf16.mxu0 %v1865_v35  ;;  %1896 = vmatpush1.bf16.msra.mxu1 %v1895_v62  ;;  %v1145_v14 = vld [vmem:[#allocation12 + $0x388] sm:$0xff]  ;;  %v1899_v7 = vpack.c.bf16 %v1126_v3, %v1122_v2  ;;  %v1901_v0 = vpack.c.bf16 %v1135_v11, %v1131_v10  ;;  %v1130_v9 = vld [vmem:[#allocation12 + $0x310] sm:$0xff]  ;;  %v1139_v46 = vld [vmem:[#allocation12 + $0x358] sm:$0xff]  ;;  %v1875_v43 = vpack.c.bf16 %v1140_v44, %v1136_v13  ;;  %v1333_v11 = vstv %s1332_s26 }
 0x3c1   : > { %v1149_v8 = vld [vmem:[#allocation12 + $0x3a8] sm:$0xff]  ;;  %1898 = vmatprep.subr.bf16.mxu1 %v1897_v52  ;;  %v1134_v15 = vld [vmem:[#allocation12 + $0x330] sm:$0xff]  ;;  %v1143_v47 = vld [vmem:[#allocation12 + $0x378] sm:$0xff]  ;;  %vm1334_vm1 = vcmp.eq.s32.totalorder %v1333_v11, 1 }
 0x3c2   : > { %v1877_v48 = vpack.c.bf16 %v1149_v8, %v1145_v14  ;;  %v1144_v16 = vld [vmem:[#allocation12 + $0x380] sm:$0xff]  ;;  %v1153_v18 = vld [vmem:[#allocation12 + $0x3c8] sm:$0xff]  ;;  %v1903_v1 = vpack.c.bf16 %v1134_v15, %v1130_v9  ;;  %v1905_v20 = vpack.c.bf16 %v1143_v47, %v1139_v46  ;;  %v1138_v21 = vld [vmem:[#allocation12 + $0x350] sm:$0xff] }
 0x3c3   : > { %1868 = vmatpush1.bf16.msra.mxu0 %v1867_v56  ;;  %v1148_v17 = vld [vmem:[#allocation12 + $0x3a0] sm:$0xff]  ;;  %v1157_v19 = vld [vmem:[#allocation12 + $0x3e8] sm:$0xff]  ;;  %v1142_v22 = vld [vmem:[#allocation12 + $0x370] sm:$0xff] }
 0x3c4   : > { %1870 = vmatprep.subr.bf16.mxu0 %v1869_v60  ;;  %1900 = vmatpush1.bf16.msra.mxu1 %v1899_v7  ;;  %v1147_v23 = vld [vmem:[#allocation12 + $0x398] sm:$0xff]  ;;  %v1879_v25 = vpack.c.bf16 %v1148_v17, %v1144_v16  ;;  %v1881_v26 = vpack.c.bf16 %v1157_v19, %v1153_v18  ;;  %v1152_v27 = vld [vmem:[#allocation12 + $0x3c0] sm:$0xff]  ;;  %v1907_v28 = vpack.c.bf16 %v1142_v22, %v1138_v21  ;;  %v1146_v30 = vld [vmem:[#allocation12 + $0x390] sm:$0xff] }
 0x3c5   : > { %1902 = vmatprep.subr.bf16.mxu1 %v1901_v0  ;;  %v1151_v24 = vld [vmem:[#allocation12 + $0x3b8] sm:$0xff]  ;;  %v1156_v63 = vld [vmem:[#allocation12 + $0x3e0] sm:$0xff]  ;;  %v1150_v31 = vld [vmem:[#allocation12 + $0x3b0] sm:$0xff] }
 0x3c6   : > { %v1909_v29 = vpack.c.bf16 %v1151_v24, %v1147_v23  ;;  %v1155_v32 = vld [vmem:[#allocation12 + $0x3d8] sm:$0xff]  ;;  %v1883_v34 = vpack.c.bf16 %v1156_v63, %v1152_v27  ;;  %v1911_v35 = vpack.c.bf16 %v1150_v31, %v1146_v30  ;;  %v1154_v37 = vld [vmem:[#allocation12 + $0x3d0] sm:$0xff]  ;;  %v1091_v40 = vld [vmem:[%s1090_s0] sm:$0xff] }
 0x3c7   : > { %1872 = vmatpush1.bf16.msra.mxu0 %v1871_v6  ;;  %v1159_v33 = vld [vmem:[#allocation12 + $0x3f8] sm:$0xff]  ;;  %v1158_v38 = vld [vmem:[#allocation12 + $0x3f0] sm:$0xff]  ;;  %v1092_v41 = vld [vmem:[%s1090_s0 + $0x8] sm:$0xff] }
 0x3c8   : > { %1874 = vmatprep.subr.bf16.mxu0 %v1873_v12  ;;  %1904 = vmatpush1.bf16.msra.mxu1 %v1903_v1  ;;  %v1913_v36 = vpack.c.bf16 %v1159_v33, %v1155_v32  ;;  %v1915_v39 = vpack.c.bf16 %v1158_v38, %v1154_v37  ;;  %v1094_v57 = vld [vmem:[%s1090_s0 + $0x18] sm:$0xff]  ;;  %v1093_v61 = vld [vmem:[%s1090_s0 + $0x10] sm:$0xff]  ;;  %v1350_v47 = vld [vmem:[#allocation14] sm:$0xff] (%p1082_p1) }
 0x3c9   : > { %1906 = vmatprep.subr.bf16.mxu1 %v1905_v20  ;;  %v1353_v16 = vld [vmem:[#allocation14 + $0x18] sm:$0xff] (%p1082_p1)  ;;  %v1354_v18 = vld [vmem:[#allocation14 + $0x20] sm:$0xff] (%p1082_p1)  ;;  %v1355_v1 = vld [vmem:[#allocation14 + $0x28] sm:$0xff] (%p1082_p1) }
 0x3ca   :  { %v1925_v19 = vpack.c.bf16 (%p1082_p1), %v1355_v1, %v1354_v18  ;;  %v1356_v21 = vld [vmem:[#allocation14 + $0x30] sm:$0xff] (%p1082_p1)  ;;  %v1357_v22 = vld [vmem:[#allocation14 + $0x38] sm:$0xff] (%p1082_p1)  ;;  %v1358_v24 = vld [vmem:[#allocation14 + $0x40] sm:$0xff] (%p1082_p1) }
 0x3cb   : > { %1876 = vmatpush1.bf16.msra.mxu0 %v1875_v43  ;;  %v1351_v43 = vld [vmem:[#allocation14 + $0x8] sm:$0xff] (%p1082_p1)  ;;  %v1929_v23 = vpack.c.bf16 (%p1082_p1), %v1357_v22, %v1356_v21  ;;  %v1360_v27 = vld [vmem:[#allocation14 + $0x50] sm:$0xff] (%p1082_p1)  ;;  %v1361_v63 = vld [vmem:[#allocation14 + $0x58] sm:$0xff] (%p1082_p1) }
 0x3cc   : > { %1878 = vmatprep.subr.bf16.mxu0 %v1877_v48  ;;  %1908 = vmatpush1.bf16.msra.mxu1 %v1907_v28  ;;  %v1352_v48 = vld [vmem:[#allocation14 + $0x10] sm:$0xff] (%p1082_p1)  ;;  %v1937_v28 = vpack.c.bf16 (%p1082_p1), %v1361_v63, %v1360_v27  ;;  %v1363_v30 = vld [vmem:[#allocation14 + $0x68] sm:$0xff] (%p1082_p1)  ;;  %v1365_v33 = vld [vmem:[#allocation14 + $0x78] sm:$0xff] (%p1082_p1) }
 0x3cd   : > { %1910 = vmatprep.subr.bf16.mxu1 %v1909_v29  ;;  %v1921_v17 = vpack.c.bf16 (%p1082_p1), %v1353_v16, %v1352_v48  ;;  %v1362_v29 = vld [vmem:[#allocation14 + $0x60] sm:$0xff] (%p1082_p1)  ;;  %v1364_v32 = vld [vmem:[#allocation14 + $0x70] sm:$0xff] (%p1082_p1) }
 0x3ce   :  { %v1941_v31 = vpack.c.bf16 (%p1082_p1), %v1363_v30, %v1362_v29 }
 0x3cf   : > { %1880 = vmatpush1.bf16.msra.mxu0 %v1879_v25  ;;  %v1359_v25 = vld [vmem:[#allocation14 + $0x48] sm:$0xff] (%p1082_p1) }
 0x3d0   : > { %1882 = vmatprep.subr.bf16.mxu0 %v1881_v26  ;;  %1912 = vmatpush1.bf16.msra.mxu1 %v1911_v35  ;;  %v1933_v26 = vpack.c.bf16 (%p1082_p1), %v1359_v25, %v1358_v24 }
 0x3d1   : > { %1914 = vmatprep.subr.bf16.mxu1 %v1913_v36 }
 0x3d3   : > { %1884 = vmatpush1.bf16.msra.mxu0 %v1883_v34  ;;  %v1945_v34 = vpack.c.bf16 (%p1082_p1), %v1365_v33, %v1364_v32 }
 0x3d4   : > { %1916 = vmatpush1.bf16.msra.mxu1 %v1915_v39 }
 0x3d6   : > { %1225 = vmatmul.mubr.f32.vlgmr.msra.gmra.mrb[0].mxu0 %v2288_v4 }
 0x3d7   : > { %1296 = vmatmul.mubr.f32.vlgmr.msra.gmra.mrb[0].mxu1 %v2288_v4 }
 0x4a9   : > { %v1226_v42 = vpop.f32.mrb[0].mxu0 }
 0x4aa   : > { %v1302_v45 = vadd.f32 %v1226_v42, %v1091_v40  ;;  %v1228_v53 = vpop.f32.mrb[1].mxu0  ;;  %v1297_v58 = vpop.f32.mrb[0].mxu1  ;;  %v1493_v42 = vld [vmem:[#allocation3] sm:$0xff] (%p1082_p1) }
 0x4ab   : > { %v1303_v54 = vadd.f32 %v1228_v53, %v1092_v41  ;;  %v1299_v59 = vpop.f32.mrb[1].mxu1  ;;  %v1304_v49 = vadd.f32 %v1297_v58, %v1093_v61  ;;  %v1489_v41 = vld [vmem:[#allocation2] sm:$0xff] (%p1082_p1) }
 0x4ac   : > { %v1586_v55 = vmul.f32 -1.442695, %v1302_v45  ;;  %v1305_v60 = vadd.f32 %v1299_v59, %v1094_v57  ;;  %1491 = vst [vmem:[#allocation16] sm:$0xff] (%p1082_p1), %v1489_v41 }
 0x4ad   : > { %v1587_v56 = vmul.f32 -1.442695, %v1303_v54 }
 0x4ae   : > { %2044 = vpow2.f32 %v1586_v55  ;;  %v1588_v62 = vmul.f32 -1.442695, %v1305_v60 }
 0x4af   : > { %2046 = vpow2.f32 %v1587_v56 }
 0x4b0   : > { %2048 = vpow2.f32 %v1588_v62 }
 0x4b1   : > { %2050 = vtanh.f32 %v1304_v49 }
 0x4b8   : > { %v2045_v50 = vpop.eup %2044 }
 0x4b9   : > { %v2047_v51 = vpop.eup %2046  ;;  %v1309_v52 = vadd.f32 1.0, %v2045_v50 }
 0x4ba   : > { %v1315_v2 = vadd.f32 1.0, %v2047_v51  ;;  %v2049_v3 = vpop.eup %2048 }
 0x4bb   : > { %2052 = vrcp.f32 %v1309_v52  ;;  %v2051_v6 = vpop.eup %2050  ;;  %v1322_v12 = vadd.f32 1.0, %v2049_v3 }
 0x4bc   : > { %2054 = vrcp.f32 %v1315_v2 }
 0x4bd   : > { %2056 = vrcp.f32 %v1322_v12 }
 0x4c5   : > { %v2053_v10 = vpop.eup %2052 }
 0x4c6   : > { %v2055_v13 = vpop.eup %2054  ;;  %v1326_v44 = vmul.f32 %v2053_v10, %v2051_v6 }
 0x4c7   : > { %v1325_v14 = vmul.f32 %v2284_v5, %v2055_v13  ;;  %v2057_v0 = vpop.eup %2056 }
 0x4c9   : > { %v1327_v7 = vadd.f32 %v1326_v44, %v1325_v14 }
 0x4cb   : > { %2058 = vtanh.f32 %v1327_v7  ;;  %v1336_v8 = vsel %vm1334_vm1, %v1327_v7, %v2284_v5  }
 0x4cc   : > { %v2704_v5 = vmov %v1336_v8  ;;  %1341 = vst [vmem:[#allocation3 + $0x8] sm:$0xff] (%p1082_p1), %v1336_v8  ;;  %1496 = vst [vmem:[#allocation18 + $0x8] sm:$0xff] (%p1082_p1), %v1336_v8 }
 0x4d3   :  { %1084 = sbr.rel (!%p1082_p1) target bundleno = 946 (0x3b2), region = 125 }
 0x4d5   : > { %v2059_v9 = vpop.eup %2058 }
 0x4d6   : > { %v1329_v15 = vmul.f32 %v2059_v9, %v2057_v0 }
 0x4d8   : > { %v1335_v46 = vsel %vm1334_vm1, %v1329_v15, %v2288_v4  }
 0x4d9   : > { %1339 = vst [vmem:[%s1338_s21] sm:$0xff] %v1335_v46  ;;  %v2705_v4 = vmov %v1335_v46  ;;  %1340 = vst [vmem:[#allocation2 + $0x8] sm:$0xff] (%p1082_p1), %v1335_v46 }
 0x4da   :  { %1492 = vst [vmem:[#allocation16 + $0x8] sm:$0xff] %v1335_v46  ;;  %v1917_v4 = vpack.c.bf16 %v1351_v43, %v1350_v47 }
 0x4dc   :  { %1918 = vmatprep.subr.bf16.mxu0 %v1917_v4  ;;  %1949 = vmatprep.subr.bf16.mxu1 %v1917_v4 }
 0x4dd   :  { %1920 = vmatpush3.bf16.msra.mxu0 %v1917_v4  ;;  %1957 = vmatpush3.bf16.msra.mxu1 %v1917_v4 }
 0x4de   :  { %1922 = vmatprep.subr.bf16.mxu0 %v1921_v17  ;;  %1950 = vmatprep.subr.bf16.mxu1 %v1921_v17 }
 0x4e0   :  { %v1342_v20 = vld [vmem:[#allocation4] sm:$0xff]  ;;  %v1343_v35 = vld [vmem:[#allocation4 + $0x8] sm:$0xff]  ;;  %v1344_v37 = vld [vmem:[#allocation4 + $0x10] sm:$0xff] }
 0x4e1   :  { %v1346_v5 = vld [vmem:[#allocation4 + $0x20] sm:$0xff]  ;;  %1649 = vmatprep.mubr.f32.mxu0 %v1342_v20  ;;  %1924 = vmatpush3.bf16.msra.mxu0 %v1921_v17  ;;  %v1347_v36 = vld [vmem:[#allocation4 + $0x28] sm:$0xff]  ;;  %v1348_v38 = vld [vmem:[#allocation4 + $0x30] sm:$0xff] }
 0x4e2   :  { %1655 = vmatprep.mubr.f32.mxu1 %v1346_v5  ;;  %1958 = vmatpush3.bf16.msra.mxu1 %v1921_v17  ;;  %v1345_v39 = vld [vmem:[#allocation4 + $0x18] sm:$0xff] }
 0x4e3   :  { %1926 = vmatprep.subr.bf16.mxu0 %v1925_v19  ;;  %1951 = vmatprep.subr.bf16.mxu1 %v1925_v19  ;;  %v1349_v40 = vld [vmem:[#allocation4 + $0x38] sm:$0xff] }
 0x4e5   :  { %1928 = vmatpush3.bf16.msra.mxu0 %v1925_v19 }
 0x4e6   :  { %1959 = vmatpush3.bf16.msra.mxu1 %v1925_v19  ;;  %1930 = vmatprep.subr.bf16.mxu0 %v1929_v23 }
 0x4e7   :  { %1952 = vmatprep.subr.bf16.mxu1 %v1929_v23 }
 0x4e9   :  { %1932 = vmatpush3.bf16.msra.mxu0 %v1929_v23 }
 0x4ea   :  { %1960 = vmatpush3.bf16.msra.mxu1 %v1929_v23  ;;  %1934 = vmatprep.subr.bf16.mxu0 %v1933_v26 }
 0x4eb   :  { %1953 = vmatprep.subr.bf16.mxu1 %v1933_v26 }
 0x4ed   :  { %1936 = vmatpush3.bf16.msra.mxu0 %v1933_v26 }
 0x4ee   :  { %1961 = vmatpush3.bf16.msra.mxu1 %v1933_v26  ;;  %1938 = vmatprep.subr.bf16.mxu0 %v1937_v28 }
 0x4ef   :  { %1954 = vmatprep.subr.bf16.mxu1 %v1937_v28 }
 0x4f1   :  { %1940 = vmatpush3.bf16.msra.mxu0 %v1937_v28 }
 0x4f2   :  { %1962 = vmatpush3.bf16.msra.mxu1 %v1937_v28  ;;  %1942 = vmatprep.subr.bf16.mxu0 %v1941_v31 }
 0x4f3   :  { %1955 = vmatprep.subr.bf16.mxu1 %v1941_v31 }
 0x4f5   :  { %1944 = vmatpush3.bf16.msra.mxu0 %v1941_v31 }
 0x4f6   :  { %1963 = vmatpush3.bf16.msra.mxu1 %v1941_v31  ;;  %1946 = vmatprep.subr.bf16.mxu0 %v1945_v34 }
 0x4f7   :  { %1956 = vmatprep.subr.bf16.mxu1 %v1945_v34 }
 0x4f9   :  { %1948 = vmatpush3.bf16.msra.mxu0 %v1945_v34 }
 0x4fa   :  { %1964 = vmatpush3.bf16.msra.mxu1 %v1945_v34 }
 0x4fc   :  { %1650 = vmatmul.mubr.f32.vlgmr.msra.gmra.mrb[0].mxu0 %v1343_v35 }
 0x4fd   :  { %1656 = vmatmul.mubr.f32.vlgmr.msra.gmra.mrb[0].mxu1 %v1347_v36  ;;  %1652 = vmatprep.mubr.f32.mxu0 %v1344_v37 }
 0x4fe   :  { %1658 = vmatprep.mubr.f32.mxu1 %v1348_v38 }
 0x500   :  { %1653 = vmatmul.mubr.f32.gmra.mrb[2].mxu0 %v1345_v39 }
 0x501   :  { %1659 = vmatmul.mubr.f32.gmra.mrb[2].mxu1 %v1349_v40 }
 0x502   :  { %2181 = shalt.err (!%p2178_p6)
}
 0x503   :  { %s2182_s29 = scalar_lea.hbm %s2700_s8, 256 }
 0x504   :  { %p2183_p7 = scmp.ne.s32.totalorder %s2700_s8, %s2182_s29  ;;  %p2186_p8 = scmp.lt.u32.totalorder %s2182_s29, %s2700_s8 }
 0x506   :  { %p2188_p9 = pnand %p2186_p8, %p2183_p7 }
 0x508   :  { %2191 = shalt.err (!%p2188_p9)
}
 0x509   :  { %1520 = dma.vmem_to_hbm [thread:$0]  %s1515_s23, 256, %s2700_s8, [#allocation17], %s2299_s3, %s2299_s3, %s2300_s24   ;;  %1495 = vst [vmem:[#allocation18] sm:$0xff] %v1493_v42 }
 0x50a   :  { %s2307_s12 = smov [#allocation18]  }
 0x50b   :  { %s1526_s13 = sshll.u32 %s2307_s12, 4  ;;  %s1527_s13 = int_to_ptr.vmem [resolvable:$true] %s1526_s13 }
 0x50c   :  { %s2192_s1 = scalar_lea.vmem %s1527_s13, 256  ;;  %p2197_p11 = scmp.lt.s32.totalorder %s1527_s13, %s1527_s13 }
 0x50d   :  { %p2193_p10 = scmp.ne.s32.totalorder %s1527_s13, %s2192_s1  ;;  %p2198_p12 = scmp.lt.s32.totalorder %s2192_s1, %s2192_s1 }
 0x50f   :  { %p2199_p13 = por %p2198_p12, %p2197_p11 }
 0x511   :  { %p2200_p0 = pnand %p2199_p13, %p2193_p10 }
 0x513   :  { %2203 = shalt.err (!%p2200_p0)
}
 0x514   :  { %s2204_s15 = scalar_lea.hbm %s2701_s9, 256 }
 0x515   :  { %p2205_p1 = scmp.ne.s32.totalorder %s2701_s9, %s2204_s15  ;;  %p2208_p2 = scmp.lt.u32.totalorder %s2204_s15, %s2701_s9 }
 0x517   :  { %p2210_p3 = pnand %p2208_p2, %p2205_p1 }
 0x519   :  { %2213 = shalt.err (!%p2210_p3)
}
 0x51a   :  { %1532 = dma.vmem_to_hbm [thread:$0]  %s1527_s13, 256, %s2701_s9, [#allocation17], %s2299_s3, %s2299_s3, %s2300_s24  }
 0x51b   :  { %v1590_v45 = vld [vmem:[%s2698_s6] ss:$0 sm:$0xff]  ;;  %s2308_s22 = smov [#allocation15]  }
 0x51c   :  { %s1502_s23 = sshll.u32 %s2308_s22, 4  ;;  %s1503_s23 = int_to_ptr.vmem [resolvable:$true] %s1502_s23 }
 0x51d   :  { %s2214_s6 = scalar_lea.vmem %s1503_s23, 1024  ;;  %p2219_p5 = scmp.lt.s32.totalorder %s1503_s23, %s1503_s23 }
 0x51e   :  { %p2215_p4 = scmp.ne.s32.totalorder %s1503_s23, %s2214_s6  ;;  %p2220_p6 = scmp.lt.s32.totalorder %s2214_s6, %s2214_s6 }
 0x520   :  { %p2221_p7 = por %p2220_p6, %p2219_p5 }
 0x522   :  { %p2222_p8 = pnand %p2221_p7, %p2215_p4 }
 0x5cf   :  { %v1651_v53 = vpop.f32.mrb[0].mxu0 }
 0x5d0   :  { %v1657_v54 = vpop.f32.mrb[0].mxu1  ;;  %v1445_v55 = vadd.f32 %v1651_v53, %v1590_v45  ;;  %v1439_v57 = vpop.f32.mrb[1].mxu0 }
 0x5d1   :  { %v1465_v56 = vadd.f32 %v1657_v54, %v1590_v45  ;;  %v1459_v58 = vpop.f32.mrb[1].mxu1  ;;  %v1440_v59 = vadd.f32 %v1590_v45, %v1439_v57 }
 0x5d2   :  { %v1460_v60 = vadd.f32 %v1590_v45, %v1459_v58  ;;  %1479 = vst [vmem:[#allocation15 + $0x8] sm:$0xff] %v1445_v55 }
 0x5d3   :  { %1483 = vst [vmem:[#allocation15 + $0x28] sm:$0xff] %v1465_v56  ;;  %1478 = vst [vmem:[#allocation15] sm:$0xff] %v1440_v59  ;;  %v1654_v61 = vpop.f32.mrb[2].mxu0 }
 0x5d4   :  { %1482 = vst [vmem:[#allocation15 + $0x20] sm:$0xff] %v1460_v60  ;;  %v1660_v62 = vpop.f32.mrb[2].mxu1  ;;  %v1455_v49 = vadd.f32 %v1654_v61, %v1590_v45  ;;  %v1449_v51 = vpop.f32.mrb[3].mxu0 }
 0x5d5   :  { %v1475_v50 = vadd.f32 %v1660_v62, %v1590_v45  ;;  %v1469_v52 = vpop.f32.mrb[3].mxu1  ;;  %v1450_v2 = vadd.f32 %v1590_v45, %v1449_v51 }
 0x5d6   :  { %v1470_v3 = vadd.f32 %v1590_v45, %v1469_v52  ;;  %1481 = vst [vmem:[#allocation15 + $0x18] sm:$0xff] %v1455_v49 }
 0x5d7   :  { %1485 = vst [vmem:[#allocation15 + $0x38] sm:$0xff] %v1475_v50  ;;  %1480 = vst [vmem:[#allocation15 + $0x10] sm:$0xff] %v1450_v2 }
 0x5d8   :  { %1484 = vst [vmem:[#allocation15 + $0x30] sm:$0xff] %v1470_v3 }
 0x5d9   :  { %2225 = shalt.err (!%p2222_p8)
}
 0x5da   :  { %s2226_s27 = scalar_lea.hbm %s2699_s7, 1024 }
 0x5db   :  { %p2227_p9 = scmp.ne.s32.totalorder %s2699_s7, %s2226_s27  ;;  %p2230_p10 = scmp.lt.u32.totalorder %s2226_s27, %s2699_s7 }
 0x5dd   :  { %p2232_p11 = pnand %p2230_p10, %p2227_p9 }
 0x5df   :  { %2235 = shalt.err (!%p2232_p11)
}
 0x5e0   :  { %1508 = dma.vmem_to_hbm [thread:$0]  %s1503_s23, 1024, %s2699_s7, [#allocation8], %s2299_s3, %s2299_s3, %s2300_s24  }
 0x5e1   :  { %2266 = dma.done.wait [#allocation8], 1024  }
 0x5e2   :  { %2267 = vsyncadd [#allocation8], 4294966272 }
 0x5e3   :  { %2268 = dma.done.wait [#allocation17], 512  }
 0x5e4   :  { %2269 = vsyncadd [#allocation17], 4294966784 }
 0x5e5   :  { %1542 = vsyncpa [#allocation7], 1 }
 0x5e6   :  { %1543 = vsyncpa [#allocation10], 1 }
 0x5e7   :  { %1544 = vsyncpa [#allocation13], 1 }
 0x5e8   :  { %1545 = vsyncpa [#allocation8], 1 }
 0x5e9   :  { %1546 = vsyncpa [#allocation17], 1 }

</bundles_post_ra>
